<compile_context>
chip_gen: v7x
topology: tpu7x:2x2x1
jax: 0.10.0
libtpu: 0.0.40
codegen_flags: <defaults>
</compile_context>

<pallas_src>
import functools

import jax
import jax.numpy as jnp
from jax.experimental import pallas as pl
from jax.experimental.pallas import tpu as pltpu


def _fused_gru_kernel(x_ref, w_ih1_ref, w_hh1_ref, b1_gi_ref, b1_hn_ref,
                      w_ih2_ref, w_hh2_ref, b2_gi_ref, b2_hn_ref,
                      out_ref, *, T, B, H):
    """Whole-sequence, both-layer GRU recurrence in a single kernel invocation.

    x_ref     : (T*B, F)  time-major inputs, flattened over (T, B)
    w_ih1_ref : (F, 3H)   layer-1 input weights  (pre-transposed, gates r|z|n)
    w_hh1_ref : (H, 3H)   layer-1 hidden weights (pre-transposed)
    b1_gi_ref : (1, 3H)   b_ih1 + [b_hh1_r, b_hh1_z, 0]   (folded r/z bias)
    b1_hn_ref : (1, H)    b_hh1_n  (must stay inside r * (...))
    w_ih2_ref : (H, 3H)   layer-2 input weights
    w_hh2_ref : (H, 3H)   layer-2 hidden weights
    b2_gi_ref : (1, 3H)   b_ih2 + [b_hh2_r, b_hh2_z, 0]
    b2_hn_ref : (1, H)    b_hh2_n
    out_ref   : (B, H)    final layer-2 hidden state == r_out[:, -1, :]
    """
    # Layer-1 input projection for ALL timesteps in one MXU push (the only
    # matmul of the recurrence that does not depend on the hidden state).
    gi1_all = (jnp.dot(x_ref[...], w_ih1_ref[...],
                       preferred_element_type=jnp.float32)
               + b1_gi_ref[...])                                  # (T*B, 3H)

    w_hh1 = w_hh1_ref[...]
    w_ih2 = w_ih2_ref[...]
    w_hh2 = w_hh2_ref[...]
    b1_hn = b1_hn_ref[...]
    b2_gi = b2_gi_ref[...]
    b2_hn = b2_hn_ref[...]

    def gru_cell(gi, gh, b_hn, h_prev):
        # PyTorch gate order (r, z, n); nonlinearities kept in f32 (EUP path).
        r = jax.nn.sigmoid(gi[:, 0 * H:1 * H] + gh[:, 0 * H:1 * H])
        z = jax.nn.sigmoid(gi[:, 1 * H:2 * H] + gh[:, 1 * H:2 * H])
        n = jnp.tanh(gi[:, 2 * H:3 * H] + r * (gh[:, 2 * H:3 * H] + b_hn))
        return (1.0 - z) * n + z * h_prev

    h1 = jnp.zeros((B, H), jnp.float32)               # h_0 = 0 (PyTorch default)
    h2 = jnp.zeros((B, H), jnp.float32)

    # T is tiny and static -> fully unrolled in-kernel loop: no grid-step
    # overhead, no per-step DMAs, carried state stays in vregs.
    for t in range(T):
        # ---- layer 1 ----
        gi1 = gi1_all[t * B:(t + 1) * B, :]           # static sublane slice
        gh1 = jnp.dot(h1, w_hh1, preferred_element_type=jnp.float32)
        h1 = gru_cell(gi1, gh1, b1_hn, h1)

        # ---- layer 2 (consumes h1 of the same timestep) ----
        gi2 = jnp.dot(h1, w_ih2, preferred_element_type=jnp.float32) + b2_gi
        gh2 = jnp.dot(h2, w_hh2, preferred_element_type=jnp.float32)
        h2 = gru_cell(gi2, gh2, b2_hn, h2)

    out_ref[...] = h2.astype(out_ref.dtype)


def gru_forward(x_btf, params):
    """Full module forward: 2-layer GRU, last timestep, dropout(eval)=identity."""
    assert len(params) == 2, "fused kernel implements the module's num_layers=2"
    B, T, F = x_btf.shape
    H = params[0]["w_hh"].shape[1]

    # batch_first (B, T, F) -> time-major flattened (T*B, F): the whole
    # sequence becomes one VMEM-resident operand for a single batched matmul.
    x_flat = jnp.transpose(x_btf, (1, 0, 2)).reshape(T * B, F).astype(jnp.float32)

    def fold(p):
        w_ih_t = p["w_ih"].T.astype(jnp.float32)      # (in_dim, 3H)
        w_hh_t = p["w_hh"].T.astype(jnp.float32)      # (H, 3H)
        b_ih, b_hh = p["b_ih"], p["b_hh"]
        # Fold b_hh for the r/z gates into the gi-side bias; keep b_hh_n apart
        # because it sits inside r * (W_hn h + b_hn).
        b_gi = (b_ih + jnp.concatenate([b_hh[:2 * H], jnp.zeros((H,), jnp.float32)])
                ).reshape(1, 3 * H).astype(jnp.float32)
        b_hn = b_hh[2 * H:].reshape(1, H).astype(jnp.float32)
        return w_ih_t, w_hh_t, b_gi, b_hn

    w_ih1, w_hh1, b1_gi, b1_hn = fold(params[0])
    w_ih2, w_hh2, b2_gi, b2_hn = fold(params[1])

    kernel = functools.partial(_fused_gru_kernel, T=T, B=B, H=H)
    vmem_specs = [pl.BlockSpec(memory_space=pltpu.MemorySpace.VMEM)
                  for _ in range(9)]

    out = pl.pallas_call(
        kernel,
        out_shape=jax.ShapeDtypeStruct((B, H), jnp.float32),
        in_specs=vmem_specs,
        out_specs=pl.BlockSpec(memory_space=pltpu.MemorySpace.VMEM),
    )(x_flat, w_ih1, w_hh1, b1_gi, b1_hn, w_ih2, w_hh2, b2_gi, b2_hn)

    # TODO(synk): nn.Dropout(p=0.1) is identity in eval mode; training-mode dropout not applied.
    return out


def init_gru_params(key, feat_size, hidden, num_layers):
    """Deterministic init mimicking PyTorch GRU (uniform(-1/sqrt(H), 1/sqrt(H)))."""
    params = []
    bound = 1.0 / jnp.sqrt(jnp.float32(hidden))
    for layer in range(num_layers):
        in_dim = feat_size if layer == 0 else hidden
        key, k1, k2, k3, k4 = jax.random.split(key, 5)
        params.append(dict(
            w_ih=jax.random.uniform(k1, (3 * hidden, in_dim), jnp.float32, -bound, bound),
            w_hh=jax.random.uniform(k2, (3 * hidden, hidden), jnp.float32, -bound, bound),
            b_ih=jax.random.uniform(k3, (3 * hidden,), jnp.float32, -bound, bound),
            b_hh=jax.random.uniform(k4, (3 * hidden,), jnp.float32, -bound, bound),
        ))
    return params


def gru_forward_ref(x_btf, params):
    """Pure-JAX reference (lax.scan) with identical semantics, for verification."""
    def layer(x_tbf, p):
        w_ih, w_hh, b_ih, b_hh = p["w_ih"], p["w_hh"], p["b_ih"], p["b_hh"]
        H = w_hh.shape[1]

        def step(h, x_t):
            gi = x_t @ w_ih.T + b_ih
            gh = h @ w_hh.T + b_hh
            r = jax.nn.sigmoid(gi[:, :H] + gh[:, :H])
            z = jax.nn.sigmoid(gi[:, H:2 * H] + gh[:, H:2 * H])
            n = jnp.tanh(gi[:, 2 * H:] + r * gh[:, 2 * H:])
            h_new = (1.0 - z) * n + z * h
            return h_new, h_new

        h0 = jnp.zeros((x_tbf.shape[1], H), jnp.float32)
        _, ys = jax.lax.scan(step, h0, x_tbf)
        return ys

    h_seq = jnp.transpose(x_btf, (1, 0, 2)).astype(jnp.float32)
    for p in params:
        h_seq = layer(h_seq, p)
    return h_seq[-1]


if __name__ == "__main__":
    # Small shapes consistent with the module: x is (batch, timesteps, featSize)
    B, T, FEAT, HIDDEN, LAYERS = 2, 8, 16, 32, 2

    key = jax.random.PRNGKey(0)
    key, xkey = jax.random.split(key)
    x = jax.random.normal(xkey, (B, T, FEAT), jnp.float32)

    params = init_gru_params(key, FEAT, HIDDEN, LAYERS)

    out = jax.block_until_ready(gru_forward(x, params))

    ref = gru_forward_ref(x, params)
    assert out.shape == (B, HIDDEN)
    assert jnp.allclose(out, ref, atol=1e-5, rtol=1e-5), "mismatch vs reference"

    print("KERNEL_OK")
</pallas_src>

<mosaic_0001>
module attributes {stable_mosaic.version = 11 : i64} {
  func.func @_fused_gru_kernel(%arg0: memref<16x16xf32, #tpu.memory_space<vmem>>, %arg1: memref<16x96xf32, #tpu.memory_space<vmem>>, %arg2: memref<32x96xf32, #tpu.memory_space<vmem>>, %arg3: memref<1x96xf32, #tpu.memory_space<vmem>>, %arg4: memref<1x32xf32, #tpu.memory_space<vmem>>, %arg5: memref<32x96xf32, #tpu.memory_space<vmem>>, %arg6: memref<32x96xf32, #tpu.memory_space<vmem>>, %arg7: memref<1x96xf32, #tpu.memory_space<vmem>>, %arg8: memref<1x32xf32, #tpu.memory_space<vmem>>, %arg9: memref<2x32xf32, #tpu.memory_space<vmem>>) attributes {dimension_semantics = [], scalar_prefetch = 0 : i64, scratch_operands = 0 : i64, tpu.core_type = #tpu.core_type<tc>} {
    %c0 = arith.constant 0 : index
    %c0_0 = arith.constant 0 : index
    %0 = vector.load %arg0[%c0, %c0_0] : memref<16x16xf32, #tpu.memory_space<vmem>>, vector<16x16xf32>
    %c0_1 = arith.constant 0 : index
    %c0_2 = arith.constant 0 : index
    %1 = vector.load %arg1[%c0_1, %c0_2] : memref<16x96xf32, #tpu.memory_space<vmem>>, vector<16x96xf32>
    %cst = arith.constant dense<0.000000e+00> : vector<16x96xf32>
    %2 = tpu.matmul %0, %1, %cst {dimension_numbers = #tpu.dot_dimension_numbers<[1], [0], [0], [1], [0, 0, 1, 1], [], []>} : vector<16x16xf32>, vector<16x96xf32>, vector<16x96xf32> -> vector<16x96xf32>
    %c0_3 = arith.constant 0 : index
    %c0_4 = arith.constant 0 : index
    %3 = vector.load %arg3[%c0_3, %c0_4] : memref<1x96xf32, #tpu.memory_space<vmem>>, vector<1x96xf32>
    %4 = vector.broadcast %3 : vector<1x96xf32> to vector<16x96xf32>
    %5 = arith.addf %2, %4 : vector<16x96xf32>
    %c0_5 = arith.constant 0 : index
    %c0_6 = arith.constant 0 : index
    %6 = vector.load %arg2[%c0_5, %c0_6] : memref<32x96xf32, #tpu.memory_space<vmem>>, vector<32x96xf32>
    %c0_7 = arith.constant 0 : index
    %c0_8 = arith.constant 0 : index
    %7 = vector.load %arg5[%c0_7, %c0_8] : memref<32x96xf32, #tpu.memory_space<vmem>>, vector<32x96xf32>
    %c0_9 = arith.constant 0 : index
    %c0_10 = arith.constant 0 : index
    %8 = vector.load %arg6[%c0_9, %c0_10] : memref<32x96xf32, #tpu.memory_space<vmem>>, vector<32x96xf32>
    %c0_11 = arith.constant 0 : index
    %c0_12 = arith.constant 0 : index
    %9 = vector.load %arg4[%c0_11, %c0_12] : memref<1x32xf32, #tpu.memory_space<vmem>>, vector<1x32xf32>
    %c0_13 = arith.constant 0 : index
    %c0_14 = arith.constant 0 : index
    %10 = vector.load %arg7[%c0_13, %c0_14] : memref<1x96xf32, #tpu.memory_space<vmem>>, vector<1x96xf32>
    %c0_15 = arith.constant 0 : index
    %c0_16 = arith.constant 0 : index
    %11 = vector.load %arg8[%c0_15, %c0_16] : memref<1x32xf32, #tpu.memory_space<vmem>>, vector<1x32xf32>
    %cst_17 = arith.constant 0.000000e+00 : f32
    %12 = vector.broadcast %cst_17 : f32 to vector<2x32xf32>
    %cst_18 = arith.constant 0.000000e+00 : f32
    %13 = vector.broadcast %cst_18 : f32 to vector<2x32xf32>
    %14 = vector.extract_strided_slice %5 {offsets = [0, 0], sizes = [2, 96], strides = [1, 1]} : vector<16x96xf32> to vector<2x96xf32>
    %cst_19 = arith.constant dense<0.000000e+00> : vector<2x96xf32>
    %15 = tpu.matmul %12, %6, %cst_19 {dimension_numbers = #tpu.dot_dimension_numbers<[1], [0], [0], [1], [0, 0, 1, 1], [], []>} : vector<2x32xf32>, vector<32x96xf32>, vector<2x96xf32> -> vector<2x96xf32>
    %16 = vector.extract_strided_slice %14 {offsets = [0, 0], sizes = [2, 32], strides = [1, 1]} : vector<2x96xf32> to vector<2x32xf32>
    %17 = vector.extract_strided_slice %15 {offsets = [0, 0], sizes = [2, 32], strides = [1, 1]} : vector<2x96xf32> to vector<2x32xf32>
    %18 = arith.addf %16, %17 : vector<2x32xf32>
    %19 = arith.negf %18 : vector<2x32xf32>
    %20 = math.exp %19 : vector<2x32xf32>
    %cst_20 = arith.constant 1.000000e+00 : f32
    %21 = vector.broadcast %cst_20 : f32 to vector<2x32xf32>
    %22 = arith.addf %21, %20 : vector<2x32xf32>
    %23 = arith.divf %21, %22 : vector<2x32xf32>
    %24 = vector.extract_strided_slice %14 {offsets = [0, 32], sizes = [2, 32], strides = [1, 1]} : vector<2x96xf32> to vector<2x32xf32>
    %25 = vector.extract_strided_slice %15 {offsets = [0, 32], sizes = [2, 32], strides = [1, 1]} : vector<2x96xf32> to vector<2x32xf32>
    %26 = arith.addf %24, %25 : vector<2x32xf32>
    %27 = arith.negf %26 : vector<2x32xf32>
    %28 = math.exp %27 : vector<2x32xf32>
    %cst_21 = arith.constant 1.000000e+00 : f32
    %29 = vector.broadcast %cst_21 : f32 to vector<2x32xf32>
    %30 = arith.addf %29, %28 : vector<2x32xf32>
    %31 = arith.divf %29, %30 : vector<2x32xf32>
    %32 = vector.extract_strided_slice %14 {offsets = [0, 64], sizes = [2, 32], strides = [1, 1]} : vector<2x96xf32> to vector<2x32xf32>
    %33 = vector.extract_strided_slice %15 {offsets = [0, 64], sizes = [2, 32], strides = [1, 1]} : vector<2x96xf32> to vector<2x32xf32>
    %34 = vector.broadcast %9 : vector<1x32xf32> to vector<2x32xf32>
    %35 = arith.addf %33, %34 : vector<2x32xf32>
    %36 = arith.mulf %23, %35 : vector<2x32xf32>
    %37 = arith.addf %32, %36 : vector<2x32xf32>
    %38 = math.tanh %37 : vector<2x32xf32>
    %cst_22 = arith.constant 1.000000e+00 : f32
    %39 = vector.broadcast %cst_22 : f32 to vector<2x32xf32>
    %40 = arith.subf %39, %31 : vector<2x32xf32>
    %41 = arith.mulf %40, %38 : vector<2x32xf32>
    %42 = arith.mulf %31, %12 : vector<2x32xf32>
    %43 = arith.addf %41, %42 : vector<2x32xf32>
    %cst_23 = arith.constant dense<0.000000e+00> : vector<2x96xf32>
    %44 = tpu.matmul %43, %7, %cst_23 {dimension_numbers = #tpu.dot_dimension_numbers<[1], [0], [0], [1], [0, 0, 1, 1], [], []>} : vector<2x32xf32>, vector<32x96xf32>, vector<2x96xf32> -> vector<2x96xf32>
    %45 = vector.broadcast %10 : vector<1x96xf32> to vector<2x96xf32>
    %46 = arith.addf %44, %45 : vector<2x96xf32>
    %cst_24 = arith.constant dense<0.000000e+00> : vector<2x96xf32>
    %47 = tpu.matmul %13, %8, %cst_24 {dimension_numbers = #tpu.dot_dimension_numbers<[1], [0], [0], [1], [0, 0, 1, 1], [], []>} : vector<2x32xf32>, vector<32x96xf32>, vector<2x96xf32> -> vector<2x96xf32>
    %48 = vector.extract_strided_slice %46 {offsets = [0, 0], sizes = [2, 32], strides = [1, 1]} : vector<2x96xf32> to vector<2x32xf32>
    %49 = vector.extract_strided_slice %47 {offsets = [0, 0], sizes = [2, 32], strides = [1, 1]} : vector<2x96xf32> to vector<2x32xf32>
    %50 = arith.addf %48, %49 : vector<2x32xf32>
    %51 = arith.negf %50 : vector<2x32xf32>
    %52 = math.exp %51 : vector<2x32xf32>
    %cst_25 = arith.constant 1.000000e+00 : f32
    %53 = vector.broadcast %cst_25 : f32 to vector<2x32xf32>
    %54 = arith.addf %53, %52 : vector<2x32xf32>
    %55 = arith.divf %53, %54 : vector<2x32xf32>
    %56 = vector.extract_strided_slice %46 {offsets = [0, 32], sizes = [2, 32], strides = [1, 1]} : vector<2x96xf32> to vector<2x32xf32>
    %57 = vector.extract_strided_slice %47 {offsets = [0, 32], sizes = [2, 32], strides = [1, 1]} : vector<2x96xf32> to vector<2x32xf32>
    %58 = arith.addf %56, %57 : vector<2x32xf32>
    %59 = arith.negf %58 : vector<2x32xf32>
    %60 = math.exp %59 : vector<2x32xf32>
    %cst_26 = arith.constant 1.000000e+00 : f32
    %61 = vector.broadcast %cst_26 : f32 to vector<2x32xf32>
    %62 = arith.addf %61, %60 : vector<2x32xf32>
    %63 = arith.divf %61, %62 : vector<2x32xf32>
    %64 = vector.extract_strided_slice %46 {offsets = [0, 64], sizes = [2, 32], strides = [1, 1]} : vector<2x96xf32> to vector<2x32xf32>
    %65 = vector.extract_strided_slice %47 {offsets = [0, 64], sizes = [2, 32], strides = [1, 1]} : vector<2x96xf32> to vector<2x32xf32>
    %66 = vector.broadcast %11 : vector<1x32xf32> to vector<2x32xf32>
    %67 = arith.addf %65, %66 : vector<2x32xf32>
    %68 = arith.mulf %55, %67 : vector<2x32xf32>
    %69 = arith.addf %64, %68 : vector<2x32xf32>
    %70 = math.tanh %69 : vector<2x32xf32>
    %cst_27 = arith.constant 1.000000e+00 : f32
    %71 = vector.broadcast %cst_27 : f32 to vector<2x32xf32>
    %72 = arith.subf %71, %63 : vector<2x32xf32>
    %73 = arith.mulf %72, %70 : vector<2x32xf32>
    %74 = arith.mulf %63, %13 : vector<2x32xf32>
    %75 = arith.addf %73, %74 : vector<2x32xf32>
    %76 = vector.extract_strided_slice %5 {offsets = [2, 0], sizes = [2, 96], strides = [1, 1]} : vector<16x96xf32> to vector<2x96xf32>
    %cst_28 = arith.constant dense<0.000000e+00> : vector<2x96xf32>
    %77 = tpu.matmul %43, %6, %cst_28 {dimension_numbers = #tpu.dot_dimension_numbers<[1], [0], [0], [1], [0, 0, 1, 1], [], []>} : vector<2x32xf32>, vector<32x96xf32>, vector<2x96xf32> -> vector<2x96xf32>
    %78 = vector.extract_strided_slice %76 {offsets = [0, 0], sizes = [2, 32], strides = [1, 1]} : vector<2x96xf32> to vector<2x32xf32>
    %79 = vector.extract_strided_slice %77 {offsets = [0, 0], sizes = [2, 32], strides = [1, 1]} : vector<2x96xf32> to vector<2x32xf32>
    %80 = arith.addf %78, %79 : vector<2x32xf32>
    %81 = arith.negf %80 : vector<2x32xf32>
    %82 = math.exp %81 : vector<2x32xf32>
    %cst_29 = arith.constant 1.000000e+00 : f32
    %83 = vector.broadcast %cst_29 : f32 to vector<2x32xf32>
    %84 = arith.addf %83, %82 : vector<2x32xf32>
    %85 = arith.divf %83, %84 : vector<2x32xf32>
    %86 = vector.extract_strided_slice %76 {offsets = [0, 32], sizes = [2, 32], strides = [1, 1]} : vector<2x96xf32> to vector<2x32xf32>
    %87 = vector.extract_strided_slice %77 {offsets = [0, 32], sizes = [2, 32], strides = [1, 1]} : vector<2x96xf32> to vector<2x32xf32>
    %88 = arith.addf %86, %87 : vector<2x32xf32>
    %89 = arith.negf %88 : vector<2x32xf32>
    %90 = math.exp %89 : vector<2x32xf32>
    %cst_30 = arith.constant 1.000000e+00 : f32
    %91 = vector.broadcast %cst_30 : f32 to vector<2x32xf32>
    %92 = arith.addf %91, %90 : vector<2x32xf32>
    %93 = arith.divf %91, %92 : vector<2x32xf32>
    %94 = vector.extract_strided_slice %76 {offsets = [0, 64], sizes = [2, 32], strides = [1, 1]} : vector<2x96xf32> to vector<2x32xf32>
    %95 = vector.extract_strided_slice %77 {offsets = [0, 64], sizes = [2, 32], strides = [1, 1]} : vector<2x96xf32> to vector<2x32xf32>
    %96 = vector.broadcast %9 : vector<1x32xf32> to vector<2x32xf32>
    %97 = arith.addf %95, %96 : vector<2x32xf32>
    %98 = arith.mulf %85, %97 : vector<2x32xf32>
    %99 = arith.addf %94, %98 : vector<2x32xf32>
    %100 = math.tanh %99 : vector<2x32xf32>
    %cst_31 = arith.constant 1.000000e+00 : f32
    %101 = vector.broadcast %cst_31 : f32 to vector<2x32xf32>
    %102 = arith.subf %101, %93 : vector<2x32xf32>
    %103 = arith.mulf %102, %100 : vector<2x32xf32>
    %104 = arith.mulf %93, %43 : vector<2x32xf32>
    %105 = arith.addf %103, %104 : vector<2x32xf32>
    %cst_32 = arith.constant dense<0.000000e+00> : vector<2x96xf32>
    %106 = tpu.matmul %105, %7, %cst_32 {dimension_numbers = #tpu.dot_dimension_numbers<[1], [0], [0], [1], [0, 0, 1, 1], [], []>} : vector<2x32xf32>, vector<32x96xf32>, vector<2x96xf32> -> vector<2x96xf32>
    %107 = vector.broadcast %10 : vector<1x96xf32> to vector<2x96xf32>
    %108 = arith.addf %106, %107 : vector<2x96xf32>
    %cst_33 = arith.constant dense<0.000000e+00> : vector<2x96xf32>
    %109 = tpu.matmul %75, %8, %cst_33 {dimension_numbers = #tpu.dot_dimension_numbers<[1], [0], [0], [1], [0, 0, 1, 1], [], []>} : vector<2x32xf32>, vector<32x96xf32>, vector<2x96xf32> -> vector<2x96xf32>
    %110 = vector.extract_strided_slice %108 {offsets = [0, 0], sizes = [2, 32], strides = [1, 1]} : vector<2x96xf32> to vector<2x32xf32>
    %111 = vector.extract_strided_slice %109 {offsets = [0, 0], sizes = [2, 32], strides = [1, 1]} : vector<2x96xf32> to vector<2x32xf32>
    %112 = arith.addf %110, %111 : vector<2x32xf32>
    %113 = arith.negf %112 : vector<2x32xf32>
    %114 = math.exp %113 : vector<2x32xf32>
    %cst_34 = arith.constant 1.000000e+00 : f32
    %115 = vector.broadcast %cst_34 : f32 to vector<2x32xf32>
    %116 = arith.addf %115, %114 : vector<2x32xf32>
    %117 = arith.divf %115, %116 : vector<2x32xf32>
    %118 = vector.extract_strided_slice %108 {offsets = [0, 32], sizes = [2, 32], strides = [1, 1]} : vector<2x96xf32> to vector<2x32xf32>
    %119 = vector.extract_strided_slice %109 {offsets = [0, 32], sizes = [2, 32], strides = [1, 1]} : vector<2x96xf32> to vector<2x32xf32>
    %120 = arith.addf %118, %119 : vector<2x32xf32>
    %121 = arith.negf %120 : vector<2x32xf32>
    %122 = math.exp %121 : vector<2x32xf32>
    %cst_35 = arith.constant 1.000000e+00 : f32
    %123 = vector.broadcast %cst_35 : f32 to vector<2x32xf32>
    %124 = arith.addf %123, %122 : vector<2x32xf32>
    %125 = arith.divf %123, %124 : vector<2x32xf32>
    %126 = vector.extract_strided_slice %108 {offsets = [0, 64], sizes = [2, 32], strides = [1, 1]} : vector<2x96xf32> to vector<2x32xf32>
    %127 = vector.extract_strided_slice %109 {offsets = [0, 64], sizes = [2, 32], strides = [1, 1]} : vector<2x96xf32> to vector<2x32xf32>
    %128 = vector.broadcast %11 : vector<1x32xf32> to vector<2x32xf32>
    %129 = arith.addf %127, %128 : vector<2x32xf32>
    %130 = arith.mulf %117, %129 : vector<2x32xf32>
    %131 = arith.addf %126, %130 : vector<2x32xf32>
    %132 = math.tanh %131 : vector<2x32xf32>
    %cst_36 = arith.constant 1.000000e+00 : f32
    %133 = vector.broadcast %cst_36 : f32 to vector<2x32xf32>
    %134 = arith.subf %133, %125 : vector<2x32xf32>
    %135 = arith.mulf %134, %132 : vector<2x32xf32>
    %136 = arith.mulf %125, %75 : vector<2x32xf32>
    %137 = arith.addf %135, %136 : vector<2x32xf32>
    %138 = vector.extract_strided_slice %5 {offsets = [4, 0], sizes = [2, 96], strides = [1, 1]} : vector<16x96xf32> to vector<2x96xf32>
    %cst_37 = arith.constant dense<0.000000e+00> : vector<2x96xf32>
    %139 = tpu.matmul %105, %6, %cst_37 {dimension_numbers = #tpu.dot_dimension_numbers<[1], [0], [0], [1], [0, 0, 1, 1], [], []>} : vector<2x32xf32>, vector<32x96xf32>, vector<2x96xf32> -> vector<2x96xf32>
    %140 = vector.extract_strided_slice %138 {offsets = [0, 0], sizes = [2, 32], strides = [1, 1]} : vector<2x96xf32> to vector<2x32xf32>
    %141 = vector.extract_strided_slice %139 {offsets = [0, 0], sizes = [2, 32], strides = [1, 1]} : vector<2x96xf32> to vector<2x32xf32>
    %142 = arith.addf %140, %141 : vector<2x32xf32>
    %143 = arith.negf %142 : vector<2x32xf32>
    %144 = math.exp %143 : vector<2x32xf32>
    %cst_38 = arith.constant 1.000000e+00 : f32
    %145 = vector.broadcast %cst_38 : f32 to vector<2x32xf32>
    %146 = arith.addf %145, %144 : vector<2x32xf32>
    %147 = arith.divf %145, %146 : vector<2x32xf32>
    %148 = vector.extract_strided_slice %138 {offsets = [0, 32], sizes = [2, 32], strides = [1, 1]} : vector<2x96xf32> to vector<2x32xf32>
    %149 = vector.extract_strided_slice %139 {offsets = [0, 32], sizes = [2, 32], strides = [1, 1]} : vector<2x96xf32> to vector<2x32xf32>
    %150 = arith.addf %148, %149 : vector<2x32xf32>
    %151 = arith.negf %150 : vector<2x32xf32>
    %152 = math.exp %151 : vector<2x32xf32>
    %cst_39 = arith.constant 1.000000e+00 : f32
    %153 = vector.broadcast %cst_39 : f32 to vector<2x32xf32>
    %154 = arith.addf %153, %152 : vector<2x32xf32>
    %155 = arith.divf %153, %154 : vector<2x32xf32>
    %156 = vector.extract_strided_slice %138 {offsets = [0, 64], sizes = [2, 32], strides = [1, 1]} : vector<2x96xf32> to vector<2x32xf32>
    %157 = vector.extract_strided_slice %139 {offsets = [0, 64], sizes = [2, 32], strides = [1, 1]} : vector<2x96xf32> to vector<2x32xf32>
    %158 = vector.broadcast %9 : vector<1x32xf32> to vector<2x32xf32>
    %159 = arith.addf %157, %158 : vector<2x32xf32>
    %160 = arith.mulf %147, %159 : vector<2x32xf32>
    %161 = arith.addf %156, %160 : vector<2x32xf32>
    %162 = math.tanh %161 : vector<2x32xf32>
    %cst_40 = arith.constant 1.000000e+00 : f32
    %163 = vector.broadcast %cst_40 : f32 to vector<2x32xf32>
    %164 = arith.subf %163, %155 : vector<2x32xf32>
    %165 = arith.mulf %164, %162 : vector<2x32xf32>
    %166 = arith.mulf %155, %105 : vector<2x32xf32>
    %167 = arith.addf %165, %166 : vector<2x32xf32>
    %cst_41 = arith.constant dense<0.000000e+00> : vector<2x96xf32>
    %168 = tpu.matmul %167, %7, %cst_41 {dimension_numbers = #tpu.dot_dimension_numbers<[1], [0], [0], [1], [0, 0, 1, 1], [], []>} : vector<2x32xf32>, vector<32x96xf32>, vector<2x96xf32> -> vector<2x96xf32>
    %169 = vector.broadcast %10 : vector<1x96xf32> to vector<2x96xf32>
    %170 = arith.addf %168, %169 : vector<2x96xf32>
    %cst_42 = arith.constant dense<0.000000e+00> : vector<2x96xf32>
    %171 = tpu.matmul %137, %8, %cst_42 {dimension_numbers = #tpu.dot_dimension_numbers<[1], [0], [0], [1], [0, 0, 1, 1], [], []>} : vector<2x32xf32>, vector<32x96xf32>, vector<2x96xf32> -> vector<2x96xf32>
    %172 = vector.extract_strided_slice %170 {offsets = [0, 0], sizes = [2, 32], strides = [1, 1]} : vector<2x96xf32> to vector<2x32xf32>
    %173 = vector.extract_strided_slice %171 {offsets = [0, 0], sizes = [2, 32], strides = [1, 1]} : vector<2x96xf32> to vector<2x32xf32>
    %174 = arith.addf %172, %173 : vector<2x32xf32>
    %175 = arith.negf %174 : vector<2x32xf32>
    %176 = math.exp %175 : vector<2x32xf32>
    %cst_43 = arith.constant 1.000000e+00 : f32
    %177 = vector.broadcast %cst_43 : f32 to vector<2x32xf32>
    %178 = arith.addf %177, %176 : vector<2x32xf32>
    %179 = arith.divf %177, %178 : vector<2x32xf32>
    %180 = vector.extract_strided_slice %170 {offsets = [0, 32], sizes = [2, 32], strides = [1, 1]} : vector<2x96xf32> to vector<2x32xf32>
    %181 = vector.extract_strided_slice %171 {offsets = [0, 32], sizes = [2, 32], strides = [1, 1]} : vector<2x96xf32> to vector<2x32xf32>
    %182 = arith.addf %180, %181 : vector<2x32xf32>
    %183 = arith.negf %182 : vector<2x32xf32>
    %184 = math.exp %183 : vector<2x32xf32>
    %cst_44 = arith.constant 1.000000e+00 : f32
    %185 = vector.broadcast %cst_44 : f32 to vector<2x32xf32>
    %186 = arith.addf %185, %184 : vector<2x32xf32>
    %187 = arith.divf %185, %186 : vector<2x32xf32>
    %188 = vector.extract_strided_slice %170 {offsets = [0, 64], sizes = [2, 32], strides = [1, 1]} : vector<2x96xf32> to vector<2x32xf32>
    %189 = vector.extract_strided_slice %171 {offsets = [0, 64], sizes = [2, 32], strides = [1, 1]} : vector<2x96xf32> to vector<2x32xf32>
    %190 = vector.broadcast %11 : vector<1x32xf32> to vector<2x32xf32>
    %191 = arith.addf %189, %190 : vector<2x32xf32>
    %192 = arith.mulf %179, %191 : vector<2x32xf32>
    %193 = arith.addf %188, %192 : vector<2x32xf32>
    %194 = math.tanh %193 : vector<2x32xf32>
    %cst_45 = arith.constant 1.000000e+00 : f32
    %195 = vector.broadcast %cst_45 : f32 to vector<2x32xf32>
    %196 = arith.subf %195, %187 : vector<2x32xf32>
    %197 = arith.mulf %196, %194 : vector<2x32xf32>
    %198 = arith.mulf %187, %137 : vector<2x32xf32>
    %199 = arith.addf %197, %198 : vector<2x32xf32>
    %200 = vector.extract_strided_slice %5 {offsets = [6, 0], sizes = [2, 96], strides = [1, 1]} : vector<16x96xf32> to vector<2x96xf32>
    %cst_46 = arith.constant dense<0.000000e+00> : vector<2x96xf32>
    %201 = tpu.matmul %167, %6, %cst_46 {dimension_numbers = #tpu.dot_dimension_numbers<[1], [0], [0], [1], [0, 0, 1, 1], [], []>} : vector<2x32xf32>, vector<32x96xf32>, vector<2x96xf32> -> vector<2x96xf32>
    %202 = vector.extract_strided_slice %200 {offsets = [0, 0], sizes = [2, 32], strides = [1, 1]} : vector<2x96xf32> to vector<2x32xf32>
    %203 = vector.extract_strided_slice %201 {offsets = [0, 0], sizes = [2, 32], strides = [1, 1]} : vector<2x96xf32> to vector<2x32xf32>
    %204 = arith.addf %202, %203 : vector<2x32xf32>
    %205 = arith.negf %204 : vector<2x32xf32>
    %206 = math.exp %205 : vector<2x32xf32>
    %cst_47 = arith.constant 1.000000e+00 : f32
    %207 = vector.broadcast %cst_47 : f32 to vector<2x32xf32>
    %208 = arith.addf %207, %206 : vector<2x32xf32>
    %209 = arith.divf %207, %208 : vector<2x32xf32>
    %210 = vector.extract_strided_slice %200 {offsets = [0, 32], sizes = [2, 32], strides = [1, 1]} : vector<2x96xf32> to vector<2x32xf32>
    %211 = vector.extract_strided_slice %201 {offsets = [0, 32], sizes = [2, 32], strides = [1, 1]} : vector<2x96xf32> to vector<2x32xf32>
    %212 = arith.addf %210, %211 : vector<2x32xf32>
    %213 = arith.negf %212 : vector<2x32xf32>
    %214 = math.exp %213 : vector<2x32xf32>
    %cst_48 = arith.constant 1.000000e+00 : f32
    %215 = vector.broadcast %cst_48 : f32 to vector<2x32xf32>
    %216 = arith.addf %215, %214 : vector<2x32xf32>
    %217 = arith.divf %215, %216 : vector<2x32xf32>
    %218 = vector.extract_strided_slice %200 {offsets = [0, 64], sizes = [2, 32], strides = [1, 1]} : vector<2x96xf32> to vector<2x32xf32>
    %219 = vector.extract_strided_slice %201 {offsets = [0, 64], sizes = [2, 32], strides = [1, 1]} : vector<2x96xf32> to vector<2x32xf32>
    %220 = vector.broadcast %9 : vector<1x32xf32> to vector<2x32xf32>
    %221 = arith.addf %219, %220 : vector<2x32xf32>
    %222 = arith.mulf %209, %221 : vector<2x32xf32>
    %223 = arith.addf %218, %222 : vector<2x32xf32>
    %224 = math.tanh %223 : vector<2x32xf32>
    %cst_49 = arith.constant 1.000000e+00 : f32
    %225 = vector.broadcast %cst_49 : f32 to vector<2x32xf32>
    %226 = arith.subf %225, %217 : vector<2x32xf32>
    %227 = arith.mulf %226, %224 : vector<2x32xf32>
    %228 = arith.mulf %217, %167 : vector<2x32xf32>
    %229 = arith.addf %227, %228 : vector<2x32xf32>
    %cst_50 = arith.constant dense<0.000000e+00> : vector<2x96xf32>
    %230 = tpu.matmul %229, %7, %cst_50 {dimension_numbers = #tpu.dot_dimension_numbers<[1], [0], [0], [1], [0, 0, 1, 1], [], []>} : vector<2x32xf32>, vector<32x96xf32>, vector<2x96xf32> -> vector<2x96xf32>
    %231 = vector.broadcast %10 : vector<1x96xf32> to vector<2x96xf32>
    %232 = arith.addf %230, %231 : vector<2x96xf32>
    %cst_51 = arith.constant dense<0.000000e+00> : vector<2x96xf32>
    %233 = tpu.matmul %199, %8, %cst_51 {dimension_numbers = #tpu.dot_dimension_numbers<[1], [0], [0], [1], [0, 0, 1, 1], [], []>} : vector<2x32xf32>, vector<32x96xf32>, vector<2x96xf32> -> vector<2x96xf32>
    %234 = vector.extract_strided_slice %232 {offsets = [0, 0], sizes = [2, 32], strides = [1, 1]} : vector<2x96xf32> to vector<2x32xf32>
    %235 = vector.extract_strided_slice %233 {offsets = [0, 0], sizes = [2, 32], strides = [1, 1]} : vector<2x96xf32> to vector<2x32xf32>
    %236 = arith.addf %234, %235 : vector<2x32xf32>
    %237 = arith.negf %236 : vector<2x32xf32>
    %238 = math.exp %237 : vector<2x32xf32>
    %cst_52 = arith.constant 1.000000e+00 : f32
    %239 = vector.broadcast %cst_52 : f32 to vector<2x32xf32>
    %240 = arith.addf %239, %238 : vector<2x32xf32>
    %241 = arith.divf %239, %240 : vector<2x32xf32>
    %242 = vector.extract_strided_slice %232 {offsets = [0, 32], sizes = [2, 32], strides = [1, 1]} : vector<2x96xf32> to vector<2x32xf32>
    %243 = vector.extract_strided_slice %233 {offsets = [0, 32], sizes = [2, 32], strides = [1, 1]} : vector<2x96xf32> to vector<2x32xf32>
    %244 = arith.addf %242, %243 : vector<2x32xf32>
    %245 = arith.negf %244 : vector<2x32xf32>
    %246 = math.exp %245 : vector<2x32xf32>
    %cst_53 = arith.constant 1.000000e+00 : f32
    %247 = vector.broadcast %cst_53 : f32 to vector<2x32xf32>
    %248 = arith.addf %247, %246 : vector<2x32xf32>
    %249 = arith.divf %247, %248 : vector<2x32xf32>
    %250 = vector.extract_strided_slice %232 {offsets = [0, 64], sizes = [2, 32], strides = [1, 1]} : vector<2x96xf32> to vector<2x32xf32>
    %251 = vector.extract_strided_slice %233 {offsets = [0, 64], sizes = [2, 32], strides = [1, 1]} : vector<2x96xf32> to vector<2x32xf32>
    %252 = vector.broadcast %11 : vector<1x32xf32> to vector<2x32xf32>
    %253 = arith.addf %251, %252 : vector<2x32xf32>
    %254 = arith.mulf %241, %253 : vector<2x32xf32>
    %255 = arith.addf %250, %254 : vector<2x32xf32>
    %256 = math.tanh %255 : vector<2x32xf32>
    %cst_54 = arith.constant 1.000000e+00 : f32
    %257 = vector.broadcast %cst_54 : f32 to vector<2x32xf32>
    %258 = arith.subf %257, %249 : vector<2x32xf32>
    %259 = arith.mulf %258, %256 : vector<2x32xf32>
    %260 = arith.mulf %249, %199 : vector<2x32xf32>
    %261 = arith.addf %259, %260 : vector<2x32xf32>
    %262 = vector.extract_strided_slice %5 {offsets = [8, 0], sizes = [2, 96], strides = [1, 1]} : vector<16x96xf32> to vector<2x96xf32>
    %cst_55 = arith.constant dense<0.000000e+00> : vector<2x96xf32>
    %263 = tpu.matmul %229, %6, %cst_55 {dimension_numbers = #tpu.dot_dimension_numbers<[1], [0], [0], [1], [0, 0, 1, 1], [], []>} : vector<2x32xf32>, vector<32x96xf32>, vector<2x96xf32> -> vector<2x96xf32>
    %264 = vector.extract_strided_slice %262 {offsets = [0, 0], sizes = [2, 32], strides = [1, 1]} : vector<2x96xf32> to vector<2x32xf32>
    %265 = vector.extract_strided_slice %263 {offsets = [0, 0], sizes = [2, 32], strides = [1, 1]} : vector<2x96xf32> to vector<2x32xf32>
    %266 = arith.addf %264, %265 : vector<2x32xf32>
    %267 = arith.negf %266 : vector<2x32xf32>
    %268 = math.exp %267 : vector<2x32xf32>
    %cst_56 = arith.constant 1.000000e+00 : f32
    %269 = vector.broadcast %cst_56 : f32 to vector<2x32xf32>
    %270 = arith.addf %269, %268 : vector<2x32xf32>
    %271 = arith.divf %269, %270 : vector<2x32xf32>
    %272 = vector.extract_strided_slice %262 {offsets = [0, 32], sizes = [2, 32], strides = [1, 1]} : vector<2x96xf32> to vector<2x32xf32>
    %273 = vector.extract_strided_slice %263 {offsets = [0, 32], sizes = [2, 32], strides = [1, 1]} : vector<2x96xf32> to vector<2x32xf32>
    %274 = arith.addf %272, %273 : vector<2x32xf32>
    %275 = arith.negf %274 : vector<2x32xf32>
    %276 = math.exp %275 : vector<2x32xf32>
    %cst_57 = arith.constant 1.000000e+00 : f32
    %277 = vector.broadcast %cst_57 : f32 to vector<2x32xf32>
    %278 = arith.addf %277, %276 : vector<2x32xf32>
    %279 = arith.divf %277, %278 : vector<2x32xf32>
    %280 = vector.extract_strided_slice %262 {offsets = [0, 64], sizes = [2, 32], strides = [1, 1]} : vector<2x96xf32> to vector<2x32xf32>
    %281 = vector.extract_strided_slice %263 {offsets = [0, 64], sizes = [2, 32], strides = [1, 1]} : vector<2x96xf32> to vector<2x32xf32>
    %282 = vector.broadcast %9 : vector<1x32xf32> to vector<2x32xf32>
    %283 = arith.addf %281, %282 : vector<2x32xf32>
    %284 = arith.mulf %271, %283 : vector<2x32xf32>
    %285 = arith.addf %280, %284 : vector<2x32xf32>
    %286 = math.tanh %285 : vector<2x32xf32>
    %cst_58 = arith.constant 1.000000e+00 : f32
    %287 = vector.broadcast %cst_58 : f32 to vector<2x32xf32>
    %288 = arith.subf %287, %279 : vector<2x32xf32>
    %289 = arith.mulf %288, %286 : vector<2x32xf32>
    %290 = arith.mulf %279, %229 : vector<2x32xf32>
    %291 = arith.addf %289, %290 : vector<2x32xf32>
    %cst_59 = arith.constant dense<0.000000e+00> : vector<2x96xf32>
    %292 = tpu.matmul %291, %7, %cst_59 {dimension_numbers = #tpu.dot_dimension_numbers<[1], [0], [0], [1], [0, 0, 1, 1], [], []>} : vector<2x32xf32>, vector<32x96xf32>, vector<2x96xf32> -> vector<2x96xf32>
    %293 = vector.broadcast %10 : vector<1x96xf32> to vector<2x96xf32>
    %294 = arith.addf %292, %293 : vector<2x96xf32>
    %cst_60 = arith.constant dense<0.000000e+00> : vector<2x96xf32>
    %295 = tpu.matmul %261, %8, %cst_60 {dimension_numbers = #tpu.dot_dimension_numbers<[1], [0], [0], [1], [0, 0, 1, 1], [], []>} : vector<2x32xf32>, vector<32x96xf32>, vector<2x96xf32> -> vector<2x96xf32>
    %296 = vector.extract_strided_slice %294 {offsets = [0, 0], sizes = [2, 32], strides = [1, 1]} : vector<2x96xf32> to vector<2x32xf32>
    %297 = vector.extract_strided_slice %295 {offsets = [0, 0], sizes = [2, 32], strides = [1, 1]} : vector<2x96xf32> to vector<2x32xf32>
    %298 = arith.addf %296, %297 : vector<2x32xf32>
    %299 = arith.negf %298 : vector<2x32xf32>
    %300 = math.exp %299 : vector<2x32xf32>
    %cst_61 = arith.constant 1.000000e+00 : f32
    %301 = vector.broadcast %cst_61 : f32 to vector<2x32xf32>
    %302 = arith.addf %301, %300 : vector<2x32xf32>
    %303 = arith.divf %301, %302 : vector<2x32xf32>
    %304 = vector.extract_strided_slice %294 {offsets = [0, 32], sizes = [2, 32], strides = [1, 1]} : vector<2x96xf32> to vector<2x32xf32>
    %305 = vector.extract_strided_slice %295 {offsets = [0, 32], sizes = [2, 32], strides = [1, 1]} : vector<2x96xf32> to vector<2x32xf32>
    %306 = arith.addf %304, %305 : vector<2x32xf32>
    %307 = arith.negf %306 : vector<2x32xf32>
    %308 = math.exp %307 : vector<2x32xf32>
    %cst_62 = arith.constant 1.000000e+00 : f32
    %309 = vector.broadcast %cst_62 : f32 to vector<2x32xf32>
    %310 = arith.addf %309, %308 : vector<2x32xf32>
    %311 = arith.divf %309, %310 : vector<2x32xf32>
    %312 = vector.extract_strided_slice %294 {offsets = [0, 64], sizes = [2, 32], strides = [1, 1]} : vector<2x96xf32> to vector<2x32xf32>
    %313 = vector.extract_strided_slice %295 {offsets = [0, 64], sizes = [2, 32], strides = [1, 1]} : vector<2x96xf32> to vector<2x32xf32>
    %314 = vector.broadcast %11 : vector<1x32xf32> to vector<2x32xf32>
    %315 = arith.addf %313, %314 : vector<2x32xf32>
    %316 = arith.mulf %303, %315 : vector<2x32xf32>
    %317 = arith.addf %312, %316 : vector<2x32xf32>
    %318 = math.tanh %317 : vector<2x32xf32>
    %cst_63 = arith.constant 1.000000e+00 : f32
    %319 = vector.broadcast %cst_63 : f32 to vector<2x32xf32>
    %320 = arith.subf %319, %311 : vector<2x32xf32>
    %321 = arith.mulf %320, %318 : vector<2x32xf32>
    %322 = arith.mulf %311, %261 : vector<2x32xf32>
    %323 = arith.addf %321, %322 : vector<2x32xf32>
    %324 = vector.extract_strided_slice %5 {offsets = [10, 0], sizes = [2, 96], strides = [1, 1]} : vector<16x96xf32> to vector<2x96xf32>
    %cst_64 = arith.constant dense<0.000000e+00> : vector<2x96xf32>
    %325 = tpu.matmul %291, %6, %cst_64 {dimension_numbers = #tpu.dot_dimension_numbers<[1], [0], [0], [1], [0, 0, 1, 1], [], []>} : vector<2x32xf32>, vector<32x96xf32>, vector<2x96xf32> -> vector<2x96xf32>
    %326 = vector.extract_strided_slice %324 {offsets = [0, 0], sizes = [2, 32], strides = [1, 1]} : vector<2x96xf32> to vector<2x32xf32>
    %327 = vector.extract_strided_slice %325 {offsets = [0, 0], sizes = [2, 32], strides = [1, 1]} : vector<2x96xf32> to vector<2x32xf32>
    %328 = arith.addf %326, %327 : vector<2x32xf32>
    %329 = arith.negf %328 : vector<2x32xf32>
    %330 = math.exp %329 : vector<2x32xf32>
    %cst_65 = arith.constant 1.000000e+00 : f32
    %331 = vector.broadcast %cst_65 : f32 to vector<2x32xf32>
    %332 = arith.addf %331, %330 : vector<2x32xf32>
    %333 = arith.divf %331, %332 : vector<2x32xf32>
    %334 = vector.extract_strided_slice %324 {offsets = [0, 32], sizes = [2, 32], strides = [1, 1]} : vector<2x96xf32> to vector<2x32xf32>
    %335 = vector.extract_strided_slice %325 {offsets = [0, 32], sizes = [2, 32], strides = [1, 1]} : vector<2x96xf32> to vector<2x32xf32>
    %336 = arith.addf %334, %335 : vector<2x32xf32>
    %337 = arith.negf %336 : vector<2x32xf32>
    %338 = math.exp %337 : vector<2x32xf32>
    %cst_66 = arith.constant 1.000000e+00 : f32
    %339 = vector.broadcast %cst_66 : f32 to vector<2x32xf32>
    %340 = arith.addf %339, %338 : vector<2x32xf32>
    %341 = arith.divf %339, %340 : vector<2x32xf32>
    %342 = vector.extract_strided_slice %324 {offsets = [0, 64], sizes = [2, 32], strides = [1, 1]} : vector<2x96xf32> to vector<2x32xf32>
    %343 = vector.extract_strided_slice %325 {offsets = [0, 64], sizes = [2, 32], strides = [1, 1]} : vector<2x96xf32> to vector<2x32xf32>
    %344 = vector.broadcast %9 : vector<1x32xf32> to vector<2x32xf32>
    %345 = arith.addf %343, %344 : vector<2x32xf32>
    %346 = arith.mulf %333, %345 : vector<2x32xf32>
    %347 = arith.addf %342, %346 : vector<2x32xf32>
    %348 = math.tanh %347 : vector<2x32xf32>
    %cst_67 = arith.constant 1.000000e+00 : f32
    %349 = vector.broadcast %cst_67 : f32 to vector<2x32xf32>
    %350 = arith.subf %349, %341 : vector<2x32xf32>
    %351 = arith.mulf %350, %348 : vector<2x32xf32>
    %352 = arith.mulf %341, %291 : vector<2x32xf32>
    %353 = arith.addf %351, %352 : vector<2x32xf32>
    %cst_68 = arith.constant dense<0.000000e+00> : vector<2x96xf32>
    %354 = tpu.matmul %353, %7, %cst_68 {dimension_numbers = #tpu.dot_dimension_numbers<[1], [0], [0], [1], [0, 0, 1, 1], [], []>} : vector<2x32xf32>, vector<32x96xf32>, vector<2x96xf32> -> vector<2x96xf32>
    %355 = vector.broadcast %10 : vector<1x96xf32> to vector<2x96xf32>
    %356 = arith.addf %354, %355 : vector<2x96xf32>
    %cst_69 = arith.constant dense<0.000000e+00> : vector<2x96xf32>
    %357 = tpu.matmul %323, %8, %cst_69 {dimension_numbers = #tpu.dot_dimension_numbers<[1], [0], [0], [1], [0, 0, 1, 1], [], []>} : vector<2x32xf32>, vector<32x96xf32>, vector<2x96xf32> -> vector<2x96xf32>
    %358 = vector.extract_strided_slice %356 {offsets = [0, 0], sizes = [2, 32], strides = [1, 1]} : vector<2x96xf32> to vector<2x32xf32>
    %359 = vector.extract_strided_slice %357 {offsets = [0, 0], sizes = [2, 32], strides = [1, 1]} : vector<2x96xf32> to vector<2x32xf32>
    %360 = arith.addf %358, %359 : vector<2x32xf32>
    %361 = arith.negf %360 : vector<2x32xf32>
    %362 = math.exp %361 : vector<2x32xf32>
    %cst_70 = arith.constant 1.000000e+00 : f32
    %363 = vector.broadcast %cst_70 : f32 to vector<2x32xf32>
    %364 = arith.addf %363, %362 : vector<2x32xf32>
    %365 = arith.divf %363, %364 : vector<2x32xf32>
    %366 = vector.extract_strided_slice %356 {offsets = [0, 32], sizes = [2, 32], strides = [1, 1]} : vector<2x96xf32> to vector<2x32xf32>
    %367 = vector.extract_strided_slice %357 {offsets = [0, 32], sizes = [2, 32], strides = [1, 1]} : vector<2x96xf32> to vector<2x32xf32>
    %368 = arith.addf %366, %367 : vector<2x32xf32>
    %369 = arith.negf %368 : vector<2x32xf32>
    %370 = math.exp %369 : vector<2x32xf32>
    %cst_71 = arith.constant 1.000000e+00 : f32
    %371 = vector.broadcast %cst_71 : f32 to vector<2x32xf32>
    %372 = arith.addf %371, %370 : vector<2x32xf32>
    %373 = arith.divf %371, %372 : vector<2x32xf32>
    %374 = vector.extract_strided_slice %356 {offsets = [0, 64], sizes = [2, 32], strides = [1, 1]} : vector<2x96xf32> to vector<2x32xf32>
    %375 = vector.extract_strided_slice %357 {offsets = [0, 64], sizes = [2, 32], strides = [1, 1]} : vector<2x96xf32> to vector<2x32xf32>
    %376 = vector.broadcast %11 : vector<1x32xf32> to vector<2x32xf32>
    %377 = arith.addf %375, %376 : vector<2x32xf32>
    %378 = arith.mulf %365, %377 : vector<2x32xf32>
    %379 = arith.addf %374, %378 : vector<2x32xf32>
    %380 = math.tanh %379 : vector<2x32xf32>
    %cst_72 = arith.constant 1.000000e+00 : f32
    %381 = vector.broadcast %cst_72 : f32 to vector<2x32xf32>
    %382 = arith.subf %381, %373 : vector<2x32xf32>
    %383 = arith.mulf %382, %380 : vector<2x32xf32>
    %384 = arith.mulf %373, %323 : vector<2x32xf32>
    %385 = arith.addf %383, %384 : vector<2x32xf32>
    %386 = vector.extract_strided_slice %5 {offsets = [12, 0], sizes = [2, 96], strides = [1, 1]} : vector<16x96xf32> to vector<2x96xf32>
    %cst_73 = arith.constant dense<0.000000e+00> : vector<2x96xf32>
    %387 = tpu.matmul %353, %6, %cst_73 {dimension_numbers = #tpu.dot_dimension_numbers<[1], [0], [0], [1], [0, 0, 1, 1], [], []>} : vector<2x32xf32>, vector<32x96xf32>, vector<2x96xf32> -> vector<2x96xf32>
    %388 = vector.extract_strided_slice %386 {offsets = [0, 0], sizes = [2, 32], strides = [1, 1]} : vector<2x96xf32> to vector<2x32xf32>
    %389 = vector.extract_strided_slice %387 {offsets = [0, 0], sizes = [2, 32], strides = [1, 1]} : vector<2x96xf32> to vector<2x32xf32>
    %390 = arith.addf %388, %389 : vector<2x32xf32>
    %391 = arith.negf %390 : vector<2x32xf32>
    %392 = math.exp %391 : vector<2x32xf32>
    %cst_74 = arith.constant 1.000000e+00 : f32
    %393 = vector.broadcast %cst_74 : f32 to vector<2x32xf32>
    %394 = arith.addf %393, %392 : vector<2x32xf32>
    %395 = arith.divf %393, %394 : vector<2x32xf32>
    %396 = vector.extract_strided_slice %386 {offsets = [0, 32], sizes = [2, 32], strides = [1, 1]} : vector<2x96xf32> to vector<2x32xf32>
    %397 = vector.extract_strided_slice %387 {offsets = [0, 32], sizes = [2, 32], strides = [1, 1]} : vector<2x96xf32> to vector<2x32xf32>
    %398 = arith.addf %396, %397 : vector<2x32xf32>
    %399 = arith.negf %398 : vector<2x32xf32>
    %400 = math.exp %399 : vector<2x32xf32>
    %cst_75 = arith.constant 1.000000e+00 : f32
    %401 = vector.broadcast %cst_75 : f32 to vector<2x32xf32>
    %402 = arith.addf %401, %400 : vector<2x32xf32>
    %403 = arith.divf %401, %402 : vector<2x32xf32>
    %404 = vector.extract_strided_slice %386 {offsets = [0, 64], sizes = [2, 32], strides = [1, 1]} : vector<2x96xf32> to vector<2x32xf32>
    %405 = vector.extract_strided_slice %387 {offsets = [0, 64], sizes = [2, 32], strides = [1, 1]} : vector<2x96xf32> to vector<2x32xf32>
    %406 = vector.broadcast %9 : vector<1x32xf32> to vector<2x32xf32>
    %407 = arith.addf %405, %406 : vector<2x32xf32>
    %408 = arith.mulf %395, %407 : vector<2x32xf32>
    %409 = arith.addf %404, %408 : vector<2x32xf32>
    %410 = math.tanh %409 : vector<2x32xf32>
    %cst_76 = arith.constant 1.000000e+00 : f32
    %411 = vector.broadcast %cst_76 : f32 to vector<2x32xf32>
    %412 = arith.subf %411, %403 : vector<2x32xf32>
    %413 = arith.mulf %412, %410 : vector<2x32xf32>
    %414 = arith.mulf %403, %353 : vector<2x32xf32>
    %415 = arith.addf %413, %414 : vector<2x32xf32>
    %cst_77 = arith.constant dense<0.000000e+00> : vector<2x96xf32>
    %416 = tpu.matmul %415, %7, %cst_77 {dimension_numbers = #tpu.dot_dimension_numbers<[1], [0], [0], [1], [0, 0, 1, 1], [], []>} : vector<2x32xf32>, vector<32x96xf32>, vector<2x96xf32> -> vector<2x96xf32>
    %417 = vector.broadcast %10 : vector<1x96xf32> to vector<2x96xf32>
    %418 = arith.addf %416, %417 : vector<2x96xf32>
    %cst_78 = arith.constant dense<0.000000e+00> : vector<2x96xf32>
    %419 = tpu.matmul %385, %8, %cst_78 {dimension_numbers = #tpu.dot_dimension_numbers<[1], [0], [0], [1], [0, 0, 1, 1], [], []>} : vector<2x32xf32>, vector<32x96xf32>, vector<2x96xf32> -> vector<2x96xf32>
    %420 = vector.extract_strided_slice %418 {offsets = [0, 0], sizes = [2, 32], strides = [1, 1]} : vector<2x96xf32> to vector<2x32xf32>
    %421 = vector.extract_strided_slice %419 {offsets = [0, 0], sizes = [2, 32], strides = [1, 1]} : vector<2x96xf32> to vector<2x32xf32>
    %422 = arith.addf %420, %421 : vector<2x32xf32>
    %423 = arith.negf %422 : vector<2x32xf32>
    %424 = math.exp %423 : vector<2x32xf32>
    %cst_79 = arith.constant 1.000000e+00 : f32
    %425 = vector.broadcast %cst_79 : f32 to vector<2x32xf32>
    %426 = arith.addf %425, %424 : vector<2x32xf32>
    %427 = arith.divf %425, %426 : vector<2x32xf32>
    %428 = vector.extract_strided_slice %418 {offsets = [0, 32], sizes = [2, 32], strides = [1, 1]} : vector<2x96xf32> to vector<2x32xf32>
    %429 = vector.extract_strided_slice %419 {offsets = [0, 32], sizes = [2, 32], strides = [1, 1]} : vector<2x96xf32> to vector<2x32xf32>
    %430 = arith.addf %428, %429 : vector<2x32xf32>
    %431 = arith.negf %430 : vector<2x32xf32>
    %432 = math.exp %431 : vector<2x32xf32>
    %cst_80 = arith.constant 1.000000e+00 : f32
    %433 = vector.broadcast %cst_80 : f32 to vector<2x32xf32>
    %434 = arith.addf %433, %432 : vector<2x32xf32>
    %435 = arith.divf %433, %434 : vector<2x32xf32>
    %436 = vector.extract_strided_slice %418 {offsets = [0, 64], sizes = [2, 32], strides = [1, 1]} : vector<2x96xf32> to vector<2x32xf32>
    %437 = vector.extract_strided_slice %419 {offsets = [0, 64], sizes = [2, 32], strides = [1, 1]} : vector<2x96xf32> to vector<2x32xf32>
    %438 = vector.broadcast %11 : vector<1x32xf32> to vector<2x32xf32>
    %439 = arith.addf %437, %438 : vector<2x32xf32>
    %440 = arith.mulf %427, %439 : vector<2x32xf32>
    %441 = arith.addf %436, %440 : vector<2x32xf32>
    %442 = math.tanh %441 : vector<2x32xf32>
    %cst_81 = arith.constant 1.000000e+00 : f32
    %443 = vector.broadcast %cst_81 : f32 to vector<2x32xf32>
    %444 = arith.subf %443, %435 : vector<2x32xf32>
    %445 = arith.mulf %444, %442 : vector<2x32xf32>
    %446 = arith.mulf %435, %385 : vector<2x32xf32>
    %447 = arith.addf %445, %446 : vector<2x32xf32>
    %448 = vector.extract_strided_slice %5 {offsets = [14, 0], sizes = [2, 96], strides = [1, 1]} : vector<16x96xf32> to vector<2x96xf32>
    %cst_82 = arith.constant dense<0.000000e+00> : vector<2x96xf32>
    %449 = tpu.matmul %415, %6, %cst_82 {dimension_numbers = #tpu.dot_dimension_numbers<[1], [0], [0], [1], [0, 0, 1, 1], [], []>} : vector<2x32xf32>, vector<32x96xf32>, vector<2x96xf32> -> vector<2x96xf32>
    %450 = vector.extract_strided_slice %448 {offsets = [0, 0], sizes = [2, 32], strides = [1, 1]} : vector<2x96xf32> to vector<2x32xf32>
    %451 = vector.extract_strided_slice %449 {offsets = [0, 0], sizes = [2, 32], strides = [1, 1]} : vector<2x96xf32> to vector<2x32xf32>
    %452 = arith.addf %450, %451 : vector<2x32xf32>
    %453 = arith.negf %452 : vector<2x32xf32>
    %454 = math.exp %453 : vector<2x32xf32>
    %cst_83 = arith.constant 1.000000e+00 : f32
    %455 = vector.broadcast %cst_83 : f32 to vector<2x32xf32>
    %456 = arith.addf %455, %454 : vector<2x32xf32>
    %457 = arith.divf %455, %456 : vector<2x32xf32>
    %458 = vector.extract_strided_slice %448 {offsets = [0, 32], sizes = [2, 32], strides = [1, 1]} : vector<2x96xf32> to vector<2x32xf32>
    %459 = vector.extract_strided_slice %449 {offsets = [0, 32], sizes = [2, 32], strides = [1, 1]} : vector<2x96xf32> to vector<2x32xf32>
    %460 = arith.addf %458, %459 : vector<2x32xf32>
    %461 = arith.negf %460 : vector<2x32xf32>
    %462 = math.exp %461 : vector<2x32xf32>
    %cst_84 = arith.constant 1.000000e+00 : f32
    %463 = vector.broadcast %cst_84 : f32 to vector<2x32xf32>
    %464 = arith.addf %463, %462 : vector<2x32xf32>
    %465 = arith.divf %463, %464 : vector<2x32xf32>
    %466 = vector.extract_strided_slice %448 {offsets = [0, 64], sizes = [2, 32], strides = [1, 1]} : vector<2x96xf32> to vector<2x32xf32>
    %467 = vector.extract_strided_slice %449 {offsets = [0, 64], sizes = [2, 32], strides = [1, 1]} : vector<2x96xf32> to vector<2x32xf32>
    %468 = vector.broadcast %9 : vector<1x32xf32> to vector<2x32xf32>
    %469 = arith.addf %467, %468 : vector<2x32xf32>
    %470 = arith.mulf %457, %469 : vector<2x32xf32>
    %471 = arith.addf %466, %470 : vector<2x32xf32>
    %472 = math.tanh %471 : vector<2x32xf32>
    %cst_85 = arith.constant 1.000000e+00 : f32
    %473 = vector.broadcast %cst_85 : f32 to vector<2x32xf32>
    %474 = arith.subf %473, %465 : vector<2x32xf32>
    %475 = arith.mulf %474, %472 : vector<2x32xf32>
    %476 = arith.mulf %465, %415 : vector<2x32xf32>
    %477 = arith.addf %475, %476 : vector<2x32xf32>
    %cst_86 = arith.constant dense<0.000000e+00> : vector<2x96xf32>
    %478 = tpu.matmul %477, %7, %cst_86 {dimension_numbers = #tpu.dot_dimension_numbers<[1], [0], [0], [1], [0, 0, 1, 1], [], []>} : vector<2x32xf32>, vector<32x96xf32>, vector<2x96xf32> -> vector<2x96xf32>
    %479 = vector.broadcast %10 : vector<1x96xf32> to vector<2x96xf32>
    %480 = arith.addf %478, %479 : vector<2x96xf32>
    %cst_87 = arith.constant dense<0.000000e+00> : vector<2x96xf32>
    %481 = tpu.matmul %447, %8, %cst_87 {dimension_numbers = #tpu.dot_dimension_numbers<[1], [0], [0], [1], [0, 0, 1, 1], [], []>} : vector<2x32xf32>, vector<32x96xf32>, vector<2x96xf32> -> vector<2x96xf32>
    %482 = vector.extract_strided_slice %480 {offsets = [0, 0], sizes = [2, 32], strides = [1, 1]} : vector<2x96xf32> to vector<2x32xf32>
    %483 = vector.extract_strided_slice %481 {offsets = [0, 0], sizes = [2, 32], strides = [1, 1]} : vector<2x96xf32> to vector<2x32xf32>
    %484 = arith.addf %482, %483 : vector<2x32xf32>
    %485 = arith.negf %484 : vector<2x32xf32>
    %486 = math.exp %485 : vector<2x32xf32>
    %cst_88 = arith.constant 1.000000e+00 : f32
    %487 = vector.broadcast %cst_88 : f32 to vector<2x32xf32>
    %488 = arith.addf %487, %486 : vector<2x32xf32>
    %489 = arith.divf %487, %488 : vector<2x32xf32>
    %490 = vector.extract_strided_slice %480 {offsets = [0, 32], sizes = [2, 32], strides = [1, 1]} : vector<2x96xf32> to vector<2x32xf32>
    %491 = vector.extract_strided_slice %481 {offsets = [0, 32], sizes = [2, 32], strides = [1, 1]} : vector<2x96xf32> to vector<2x32xf32>
    %492 = arith.addf %490, %491 : vector<2x32xf32>
    %493 = arith.negf %492 : vector<2x32xf32>
    %494 = math.exp %493 : vector<2x32xf32>
    %cst_89 = arith.constant 1.000000e+00 : f32
    %495 = vector.broadcast %cst_89 : f32 to vector<2x32xf32>
    %496 = arith.addf %495, %494 : vector<2x32xf32>
    %497 = arith.divf %495, %496 : vector<2x32xf32>
    %498 = vector.extract_strided_slice %480 {offsets = [0, 64], sizes = [2, 32], strides = [1, 1]} : vector<2x96xf32> to vector<2x32xf32>
    %499 = vector.extract_strided_slice %481 {offsets = [0, 64], sizes = [2, 32], strides = [1, 1]} : vector<2x96xf32> to vector<2x32xf32>
    %500 = vector.broadcast %11 : vector<1x32xf32> to vector<2x32xf32>
    %501 = arith.addf %499, %500 : vector<2x32xf32>
    %502 = arith.mulf %489, %501 : vector<2x32xf32>
    %503 = arith.addf %498, %502 : vector<2x32xf32>
    %504 = math.tanh %503 : vector<2x32xf32>
    %cst_90 = arith.constant 1.000000e+00 : f32
    %505 = vector.broadcast %cst_90 : f32 to vector<2x32xf32>
    %506 = arith.subf %505, %497 : vector<2x32xf32>
    %507 = arith.mulf %506, %504 : vector<2x32xf32>
    %508 = arith.mulf %497, %447 : vector<2x32xf32>
    %509 = arith.addf %507, %508 : vector<2x32xf32>
    %c0_91 = arith.constant 0 : index
    %c0_92 = arith.constant 0 : index
    %510 = vector.load %arg9[%c0_91, %c0_92] : memref<2x32xf32, #tpu.memory_space<vmem>>, vector<2x32xf32>
    tpu.vector_store %arg9[%c0_91, %c0_92], %509 {strides = array<i32>} : memref<2x32xf32, #tpu.memory_space<vmem>>, vector<2x32xf32>,
    return
  }
}

</mosaic_0001>

<bundles_post_ra>
// kernel: tpu_custom_call.1
= control target key start
LH: loop header
LB: loop body
LE: loop exit
PB: predicated region body
PF: predicated region fallthrough
CT: control target
= control target key end

     0   :  { %14 = vsyncpa [#allocation3], 0  ;;  %s3856_s0 = inlined_call_operand.hbm [shape: f32[16,16], index: 0, kind: input, shape index: {}]   ;;  %s3857_s1 = inlined_call_operand.hbm [shape: f32[16,96], index: 1, kind: input, shape index: {}]   ;;  %s3858_s2 = inlined_call_operand.hbm [shape: f32[32,96], index: 2, kind: input, shape index: {}]   ;;  %s3859_s3 = inlined_call_operand.vmem [shape: f32[1,96], index: 3, kind: input, shape index: {}]   ;;  %s3860_s4 = inlined_call_operand.vmem [shape: f32[1,32], index: 4, kind: input, shape index: {}]   ;;  %s3861_s5 = inlined_call_operand.hbm [shape: f32[32,96], index: 5, kind: input, shape index: {}]   ;;  %s3862_s6 = inlined_call_operand.hbm [shape: f32[32,96], index: 6, kind: input, shape index: {}]   ;;  %s3863_s7 = inlined_call_operand.vmem [shape: f32[1,96], index: 7, kind: input, shape index: {}]   ;;  %s3864_s8 = inlined_call_operand.vmem [shape: f32[1,32], index: 8, kind: input, shape index: {}]   ;;  %s3865_s9 = inlined_call_operand.hbm [shape: f32[2,32], index: 9, kind: output, shape index: {}]  }
   0x1   :  { %15 = vsyncpa [#allocation6], 0 }
   0x2   :  { %16 = vsyncpa [#allocation9], 0 }
   0x3   :  { %17 = vsyncpa [#allocation4], 0  ;;  %s3325_s30 = smov [#allocation5]   ;;  %s3326_s11 = smov [#allocation8]  }
   0x4   :  { %s35_s10 = sshll.u32 %s3325_s30, 4  ;;  %s63_s12 = sshll.u32 %s3326_s11, 4  ;;  %s36_s10 = int_to_ptr.vmem [resolvable:$true] %s35_s10  ;;  %s3388_s12 = int_to_ptr.vmem [resolvable:$true] %s63_s12 }
   0x5   :  { %s3185_s15 = scalar_lea.hbm %s3857_s1, 256 }
   0x6   :  { %p3186_p0 = scmp.ne.s32.totalorder %s3857_s1, %s3185_s15  ;;  %p3189_p1 = scmp.lt.u32.totalorder %s3185_s15, %s3857_s1 }
   0x8   :  { %p3191_p2 = pnand %p3189_p1, %p3186_p0 }
   0xa   :  { %3194 = shalt.err (!%p3191_p2)
}
   0xb   :  { %s3195_s20 = scalar_lea.vmem %s36_s10, 256  ;;  %p3200_p4 = scmp.lt.s32.totalorder %s36_s10, %s36_s10 }
   0xc   :  { %p3196_p3 = scmp.ne.s32.totalorder %s36_s10, %s3195_s20  ;;  %p3201_p5 = scmp.lt.s32.totalorder %s3195_s20, %s3195_s20 }
   0xe   :  { %p3202_p6 = por %p3201_p5, %p3200_p4 }
  0x10   :  { %p3203_p7 = pnand %p3202_p6, %p3196_p3 }
  0x12   :  { %3206 = shalt.err (!%p3203_p7)
}
  0x13   :  { %s3327_s21 = smov 128   ;;  %s3328_s22 = smov 8  }
  0x14   :  { %41 = dma.hbm_to_vmem [thread:$0]  %s3857_s1, 256, %s36_s10, [#allocation6], %s3327_s21, %s3327_s21, %s3328_s22  }
  0x15   :  { %s3207_s27 = scalar_lea.hbm %s3861_s5, 512 }
  0x16   :  { %p3208_p8 = scmp.ne.s32.totalorder %s3861_s5, %s3207_s27  ;;  %p3211_p9 = scmp.lt.u32.totalorder %s3207_s27, %s3861_s5 }
  0x18   :  { %p3213_p10 = pnand %p3211_p9, %p3208_p8 }
  0x1a   :  { %3216 = shalt.err (!%p3213_p10)
}
  0x1b   :  { %s3217_s13 = scalar_lea.vmem %s3388_s12, 512  ;;  %p3222_p12 = scmp.lt.s32.totalorder %s3388_s12, %s3388_s12 }
  0x1c   :  { %p3218_p11 = scmp.ne.s32.totalorder %s3388_s12, %s3217_s13  ;;  %p3223_p13 = scmp.lt.s32.totalorder %s3217_s13, %s3217_s13 }
  0x1e   :  { %p3224_p0 = por %p3223_p13, %p3222_p12 }
  0x20   :  { %p3225_p1 = pnand %p3224_p0, %p3218_p11 }
  0x22   :  { %3228 = shalt.err (!%p3225_p1)
}
  0x23   :  { %69 = dma.hbm_to_vmem [thread:$0]  %s3861_s5, 512, %s3388_s12, [#allocation9], %s3327_s21, %s3327_s21, %s3328_s22  }
  0x24   :  { %s3329_s14 = smov [#allocation2]   ;;  %s3330_s16 = smov [#allocation7]  }
  0x25   :  { %s23_s15 = sshll.u32 %s3329_s14, 4  ;;  %s47_s17 = sshll.u32 %s3330_s16, 4  ;;  %s24_s15 = int_to_ptr.vmem [resolvable:$true] %s23_s15  ;;  %s3425_s17 = int_to_ptr.vmem [resolvable:$true] %s47_s17 }
  0x26   :  { %s3229_s20 = scalar_lea.hbm %s3856_s0, 256 }
  0x27   :  { %p3230_p2 = scmp.ne.s32.totalorder %s3856_s0, %s3229_s20  ;;  %p3233_p3 = scmp.lt.u32.totalorder %s3229_s20, %s3856_s0 }
  0x29   :  { %p3235_p4 = pnand %p3233_p3, %p3230_p2 }
  0x2b   :  { %3238 = shalt.err (!%p3235_p4)
}
  0x2c   :  { %s3239_s5 = scalar_lea.vmem %s24_s15, 256  ;;  %p3244_p6 = scmp.lt.s32.totalorder %s24_s15, %s24_s15 }
  0x2d   :  { %p3240_p5 = scmp.ne.s32.totalorder %s24_s15, %s3239_s5  ;;  %p3245_p7 = scmp.lt.s32.totalorder %s3239_s5, %s3239_s5 }
  0x2f   :  { %p3246_p8 = por %p3245_p7, %p3244_p6 }
  0x31   :  { %p3247_p9 = pnand %p3246_p8, %p3240_p5 }
  0x33   :  { %3250 = shalt.err (!%p3247_p9)
}
  0x34   :  { %29 = dma.hbm_to_vmem [thread:$0]  %s3856_s0, 256, %s24_s15, [#allocation3], %s3327_s21, %s3327_s21, %s3328_s22  }
  0x35   :  { %s3251_s30 = scalar_lea.hbm %s3858_s2, 512 }
  0x36   :  { %p3252_p10 = scmp.ne.s32.totalorder %s3858_s2, %s3251_s30  ;;  %p3255_p11 = scmp.lt.u32.totalorder %s3251_s30, %s3858_s2 }
  0x38   :  { %p3257_p12 = pnand %p3255_p11, %p3252_p10 }
  0x3a   :  { %3260 = shalt.err (!%p3257_p12)
}
  0x3b   :  { %s3261_s14 = scalar_lea.vmem %s3425_s17, 512  ;;  %p3266_p0 = scmp.lt.s32.totalorder %s3425_s17, %s3425_s17 }
  0x3c   :  { %p3262_p13 = scmp.ne.s32.totalorder %s3425_s17, %s3261_s14  ;;  %p3267_p1 = scmp.lt.s32.totalorder %s3261_s14, %s3261_s14 }
  0x3e   :  { %p3268_p2 = por %p3267_p1, %p3266_p0 }
  0x40   :  { %p3269_p3 = pnand %p3268_p2, %p3262_p13 }
  0x42   :  { %3272 = shalt.err (!%p3269_p3)
}
  0x43   :  { %53 = dma.hbm_to_vmem [thread:$0]  %s3858_s2, 512, %s3425_s17, [#allocation6], %s3327_s21, %s3327_s21, %s3328_s22  }
  0x44   :  { %s3331_s16 = smov [#allocation10]   ;;  %s3273_s23 = scalar_lea.hbm %s3862_s6, 512 }
  0x45   :  { %s75_s18 = sshll.u32 %s3331_s16, 4  ;;  %p3274_p4 = scmp.ne.s32.totalorder %s3862_s6, %s3273_s23  ;;  %s76_s18 = int_to_ptr.vmem [resolvable:$true] %s75_s18 }
  0x46   :  { %p3277_p5 = scmp.lt.u32.totalorder %s3273_s23, %s3862_s6 }
  0x48   :  { %p3279_p6 = pnand %p3277_p5, %p3274_p4 }
  0x4a   :  { %3282 = shalt.err (!%p3279_p6)
}
  0x4b   :  { %s3283_s12 = scalar_lea.vmem %s76_s18, 512  ;;  %p3288_p8 = scmp.lt.s32.totalorder %s76_s18, %s76_s18 }
  0x4c   :  { %p3284_p7 = scmp.ne.s32.totalorder %s76_s18, %s3283_s12  ;;  %p3289_p9 = scmp.lt.s32.totalorder %s3283_s12, %s3283_s12 }
  0x4e   :  { %p3290_p10 = por %p3289_p9, %p3288_p8 }
  0x50   :  { %p3291_p11 = pnand %p3290_p10, %p3284_p7 }
  0x52   :  { %3294 = shalt.err (!%p3291_p11)
}
  0x53   :  { %81 = dma.hbm_to_vmem [thread:$0]  %s3862_s6, 512, %s76_s18, [#allocation9], %s3327_s21, %s3327_s21, %s3328_s22  }
  0x54   :  { %3317 = dma.done.wait [#allocation3], 256  }
  0x55   :  { %3318 = vsyncadd [#allocation3], 4294967040 }
  0x56   :  { %3319 = dma.done.wait [#allocation6], 768  }
  0x57   :  { %3320 = vsyncadd [#allocation6], 4294966528 }
  0x58   :  { %3321 = dma.done.wait [#allocation9], 1024  }
  0x59   :  { %3322 = vsyncadd [#allocation9], 4294966272  ;;  %v3332_v0 = vmov 0.0|0.0   ;;  %vm3333_vm0 = vmmov 0   ;;  %v3334_v1 = vmov 0.0   ;;  %vm112_vm1 = vcmask 130048  }
  0x5a   :  { %2931 = vmatprep.subr.bf16.mxu1 %v3332_v0  ;;  %2671 = vmatprep.mubr.msk.f32.mxu1 %vm3333_vm0, %v3334_v1  ;;  %v103_v2 = vld [vmem:[#allocation5] sm:$0xff]  ;;  %v104_v3 = vld [vmem:[#allocation5 + $0x8] sm:$0xff]  ;;  %v194_v4 = vld [vmem:[#allocation7] sm:$0xff]  ;;  %s3335_s22 = smov 64   ;;  %vm209_vm2 = vcmask 261120   ;;  %vm2469_vm3 = vcmask 254976  }
  0x5b   :  { %v2927_v5 = vpack.c.bf16 %v104_v3, %v103_v2  ;;  %v195_v6 = vld [vmem:[#allocation7 + $0x8] sm:$0xff]  ;;  %v101_v7 = vld [vmem:[#allocation2] sm:$0xff]  ;;  %v196_v9 = vld [vmem:[#allocation7 + $0x10] sm:$0xff] }
  0x5c   :  { %v3480_v8 = vpack.c.bf16 %v195_v6, %v194_v4  ;;  %2660 = vmatprep.mubr.msk.f32.mxu0 %vm112_vm1, %v101_v7  ;;  %v197_v10 = vld [vmem:[#allocation7 + $0x18] sm:$0xff]  ;;  %v2492_v11 = vld [vmem:[%s3860_s4] ss:$0 sm:$0xff]  ;;  %v102_v12 = vld [vmem:[#allocation2 + $0x8] sm:$0xff] }
  0x5d   :  { %2928 = vmatprep.subr.bf16.mxu0 %v2927_v5  ;;  %295 = vrot.lane.b32.xlu0 %v2492_v11, %s3335_s22  ;;  %v3488_v13 = vpack.c.bf16 %v197_v10, %v196_v9  ;;  %v2488_v15 = vld [vmem:[%s3859_s3] ss:$0 sm:$0xff]  ;;  %v203_v33 = vld [vmem:[#allocation10 + $0x8] sm:$0xff]  ;;  %v204_v34 = vld [vmem:[#allocation10 + $0x10] sm:$0xff]  ;;  %s3336_s3 = smov 96  }
  0x5e   :  { %2933 = vmatpush3.bf16.msra.mxu1 %v3480_v8  ;;  %2930 = vmatpush3.bf16.msra.mxu0 %v2927_v5  ;;  %v202_v32 = vld [vmem:[#allocation10] sm:$0xff]  ;;  %v205_v36 = vld [vmem:[#allocation10 + $0x18] sm:$0xff]  ;;  %v199_v38 = vld [vmem:[#allocation8 + $0x8] sm:$0xff] }
  0x5f   :  { %2934 = vmatprep.subr.bf16.mxu1 %v3332_v0  ;;  %2937 = vmatprep.subr.bf16.mxu0 %v3332_v0  ;;  %v3514_v35 = vpack.c.bf16 %v203_v33, %v202_v32  ;;  %v198_v37 = vld [vmem:[#allocation8] sm:$0xff]  ;;  %v200_v40 = vld [vmem:[#allocation8 + $0x10] sm:$0xff]  ;;  %v201_v41 = vld [vmem:[#allocation8 + $0x18] sm:$0xff]  ;;  %v3519_v42 = vpack.c.bf16 %v205_v36, %v204_v34 }
  0x60   :  { %v3516_v39 = vpack.c.bf16 %v199_v38, %v198_v37  ;;  %v3523_v43 = vpack.c.bf16 %v201_v41, %v200_v40  ;;  %v2496_v47 = vld [vmem:[%s3864_s8] ss:$0 sm:$0xff] }
  0x61   :  { %2661 = vmatmul.mubr.msk.f32.vlgmr.msra.gmra.mrb[0].mxu0 %vm112_vm1, %v102_v12  ;;  %v3567_v56 = vld [vmem:[%s3863_s7] ss:$0 sm:$0xff] }
  0x62   :  { %2936 = vmatpush3.bf16.msra.mxu1 %v3488_v13  ;;  %2682 = vmatprep.mubr.msk.f32.mxu0 %vm3333_vm0, %v3334_v1 }
  0x63   :  { %2943 = vmatprep.subr.bf16.mxu1 %v3332_v0  ;;  %2939 = vmatpush3.bf16.msra.mxu0 %v3516_v39 }
  0x64   :  { %2940 = vmatprep.subr.bf16.mxu0 %v3332_v0 }
  0x65   :  { %2672 = vmatmul.mubr.f32.vlgmr.msra.gmra.mrb[0].mxu1 %v3334_v1 }
  0x66   :  { %2693 = vmatprep.mubr.msk.f32.mxu1 %vm3333_vm0, %v3334_v1  ;;  %2945 = vmatpush3.bf16.msra.mxu1 %v3514_v35 }
  0x67   :  { %2946 = vmatprep.subr.bf16.mxu1 %v3332_v0  ;;  %2942 = vmatpush3.bf16.msra.mxu0 %v3523_v43 }
  0x68   :  { %2949 = vmatprep.subr.bf16.mxu0 %v3332_v0 }
  0x6a   :  { %2948 = vmatpush3.bf16.msra.mxu1 %v3519_v42 }
  0x6b   :  { %2955 = vmatprep.subr.bf16.mxu1 %v3332_v0 }
  0x6d   :  { %2694 = vmatmul.mubr.f32.vlgmr.msra.gmra.mrb[2].mxu1 %v3334_v1 }
  0x6e   :  { %2957 = vmatpush3.bf16.msra.mxu1 %v3516_v39  ;;  %2715 = vmatprep.mubr.msk.f32.mxu1 %vm3333_vm0, %v3334_v1 }
  0x6f   :  { %2958 = vmatprep.subr.bf16.mxu1 %v3332_v0 }
  0x72   :  { %2960 = vmatpush3.bf16.msra.mxu1 %v3523_v43 }
  0x73   :  { %2967 = vmatprep.subr.bf16.mxu1 %v3332_v0 }
  0xcf   :  { %v3505_v18 = vpop.permute.xlu0 %295 }
 0x134   :  { %v2662_v14 = vpop.f32.mrb[0].mxu0 }
 0x135   :  { %v3503_v16 = vadd.f32 %v2662_v14, %v2488_v15  ;;  %v185_v17 = vpop.f32.mrb[1].mxu0 }
 0x136   :  { %v3509_v22 = vadd.f32 %v2488_v15, %v185_v17 }
 0x138   :  { %v279_v19 = vpop.f32.mrb[0].mxu1 }
 0x139   :  { %v298_v20 = vadd.f32 %v3505_v18, %v279_v19  ;;  %v2673_v21 = vpop.f32.mrb[1].mxu1  ;;  %v283_v23 = vadd.f32 %v279_v19, %v3509_v22 }
 0x13b   :  { %300 = vrot.lane.b32.xlu0 %v298_v20, %s3335_s22  ;;  %v2491_v24 = vmul.f32 -1.442695, %v283_v23 }
 0x13d   :  { %3088 = vpow2.f32 %v2491_v24 }
 0x140   :  { %v465_v51 = vpop.f32.mrb[2].mxu1 }
 0x141   :  { %v2695_v52 = vpop.f32.mrb[3].mxu1 }
 0x147   :  { %v3089_v25 = vpop.eup %3088 }
 0x148   :  { %v287_v26 = vadd.f32 1.0, %v3089_v25 }
 0x14a   :  { %3090 = vrcp.f32 %v287_v26 }
 0x154   :  { %v3091_v27 = vpop.eup %3090 }
 0x155   :  { %v310_v45 = vsub.f32 1.0, %v3091_v27  ;;  %v316_v48 = vmul.f32 0.0, %v3091_v27 }
 0x1ad   :  { %v301_v28 = vpop.permute.xlu0 %300 }
 0x1ae   :  { %v303_v29 = vmul.f32 %v3091_v27, %v301_v28 }
 0x1b0   :  { %305 = vrot.lane.b32.xlu1 %v303_v29, %s3335_s22 }
 0x222   :  { %v306_v30 = vpop.permute.xlu1 %305 }
 0x223   :  { %v308_v31 = vadd.f32 %v306_v30, %v3509_v22 }
 0x225   :  { %3092 = vtanh.f32 %v308_v31 }
 0x22f   :  { %v3093_v44 = vpop.eup %3092 }
 0x230   :  { %312 = vrot.lane.b32.xlu1 %v3093_v44, %s3336_s3 }
 0x234   :  { %481 = vrot.lane.b32.xlu1 %v2496_v47, %s3335_s22 }
 0x2a2   :  { %v313_v46 = vpop.permute.xlu1 %312 }
 0x2a3   :  { %v315_v49 = vmul.f32 %v313_v46, %v310_v45 }
 0x2a5   :  { %v3542_v50 = vadd.f32 %v316_v48, %v315_v49 }
 0x2a6   :  { %v3546_v53 = vpop.permute.xlu1 %481 }
 0x2a7   :  { %325 = vrot.lane.b32.xlu0 %v3542_v50, %s3336_s3  ;;  %v484_v54 = vadd.f32 %v3546_v53, %v465_v51  ;;  %v603_v33 = vrot.slane %v3542_v50, 6 }
 0x2a9   :  { %486 = vrot.lane.b32.xlu1 %v484_v54, %s3335_s22 }
 0x319   :  { %v326_v55 = vpop.permute.xlu0 %325 }
 0x31a   :  { %2683 = vmatmul.mubr.msk.f32.vlgmr.msra.gmra.mrb[2].mxu0 %vm209_vm2, %v326_v55 }
 0x31b   :  { %2951 = vmatpush3.bf16.msra.mxu0 %v3480_v8  ;;  %2704 = vmatprep.mubr.msk.f32.mxu0 %vm3333_vm0, %v3334_v1  ;;  %v487_v6 = vpop.permute.xlu1 %486 }
 0x31c   :  { %2952 = vmatprep.subr.bf16.mxu0 %v3332_v0 }
 0x31f   :  { %2954 = vmatpush3.bf16.msra.mxu0 %v3488_v13 }
 0x320   :  { %2961 = vmatprep.subr.bf16.mxu0 %v3332_v0 }
 0x322   :  { %2705 = vmatmul.mubr.msk.f32.vlgmr.msra.gmra.mrb[4].mxu0 %vm209_vm2, %v326_v55 }
 0x323   :  { %2963 = vmatpush3.bf16.msra.mxu0 %v3514_v35  ;;  %2726 = vmatprep.mubr.msk.f32.mxu0 %vm3333_vm0, %v3334_v1 }
 0x324   :  { %2964 = vmatprep.subr.bf16.mxu0 %v3332_v0 }
 0x327   :  { %2966 = vmatpush3.bf16.msra.mxu0 %v3519_v42 }
 0x328   :  { %2973 = vmatprep.subr.bf16.mxu0 %v3332_v0 }
 0x3ed   :  { %v395_v57 = vpop.f32.mrb[2].mxu0 }
 0x3ee   :  { %v396_v58 = vadd.f32 %v3567_v56, %v395_v57  ;;  %v2684_v59 = vpop.f32.mrb[3].mxu0 }
 0x3f0   :  { %v469_v60 = vadd.f32 %v465_v51, %v396_v58 }
 0x3f2   :  { %v2495_v61 = vmul.f32 -1.442695, %v469_v60 }
 0x3f4   :  { %3094 = vpow2.f32 %v2495_v61 }
 0x3f5   :  { %v570_v62 = vpop.f32.mrb[4].mxu0 }
 0x3f6   :  { %v584_v63 = vadd.f32 %v570_v62, %v3505_v18  ;;  %v2706_v2 = vpop.f32.mrb[5].mxu0  ;;  %v575_v10 = vrot.slane %v570_v62, 6 }
 0x3f8   :  { %v586_v3 = vrot.slane %v584_v63, 6  ;;  %v577_v11 = vadd.f32 %v575_v10, %v3509_v22 }
 0x3fa   :  { %587 = vrot.lane.b32.xlu0 %v586_v3, %s3335_s22  ;;  %v2498_v12 = vmul.f32 -1.442695, %v577_v11 }
 0x3fe   :  { %v3095_v4 = vpop.eup %3094 }
 0x3ff   :  { %v473_v5 = vadd.f32 1.0, %v3095_v4 }
 0x401   :  { %3096 = vrcp.f32 %v473_v5 }
 0x402   :  { %3098 = vpow2.f32 %v2498_v12 }
 0x40b   :  { %v3097_v7 = vpop.eup %3096 }
 0x40c   :  { %v489_v9 = vmul.f32 %v3097_v7, %v487_v6  ;;  %v3099_v14 = vpop.eup %3098  ;;  %v496_v28 = vsub.f32 1.0, %v3097_v7  ;;  %v502_v30 = vmul.f32 0.0, %v3097_v7 }
 0x40d   :  { %v581_v15 = vadd.f32 1.0, %v3099_v14 }
 0x40e   :  { %491 = vrot.lane.b32.xlu1 %v489_v9, %s3335_s22 }
 0x40f   :  { %3100 = vrcp.f32 %v581_v15 }
 0x419   :  { %v3101_v17 = vpop.eup %3100 }
 0x41a   :  { %v597_v34 = vsub.f32 1.0, %v3101_v17  ;;  %v605_v38 = vmul.f32 %v3101_v17, %v603_v33 }
 0x46c   :  { %v588_v19 = vpop.permute.xlu0 %587 }
 0x46d   :  { %v590_v20 = vmul.f32 %v3101_v17, %v588_v19 }
 0x46f   :  { %592 = vrot.lane.b32.xlu0 %v590_v20, %s3335_s22 }
 0x480   :  { %v492_v21 = vpop.permute.xlu1 %491 }
 0x481   :  { %v494_v23 = vadd.f32 %v492_v21, %v396_v58 }
 0x483   :  { %3102 = vtanh.f32 %v494_v23 }
 0x48d   :  { %v3103_v24 = vpop.eup %3102 }
 0x48e   :  { %498 = vrot.lane.b32.xlu1 %v3103_v24, %s3336_s3 }
 0x4e1   :  { %v593_v25 = vpop.permute.xlu0 %592 }
 0x4e2   :  { %v595_v26 = vadd.f32 %v593_v25, %v3509_v22 }
 0x4e4   :  { %3104 = vtanh.f32 %v595_v26 }
 0x4ee   :  { %v3105_v27 = vpop.eup %3104 }
 0x4ef   :  { %599 = vrot.lane.b32.xlu0 %v3105_v27, %s3336_s3 }
 0x500   :  { %v499_v29 = vpop.permute.xlu1 %498 }
 0x501   :  { %v501_v31 = vmul.f32 %v499_v29, %v496_v28 }
 0x503   :  { %v3578_v32 = vadd.f32 %v502_v30, %v501_v31 }
 0x505   :  { %684 = vrot.lane.b32.xlu1 %v3578_v32, %s3336_s3 }
 0x561   :  { %v600_v36 = vpop.permute.xlu0 %599 }
 0x562   :  { %v602_v37 = vmul.f32 %v600_v36, %v597_v34 }
 0x564   :  { %v3583_v40 = vadd.f32 %v605_v38, %v602_v37 }
 0x566   :  { %v608_v41 = vrot.slane %v3583_v40, 2  ;;  %v884_v27 = vrot.slane %v3583_v40, 6 }
 0x568   :  { %609 = vrot.lane.b32.xlu0 %v608_v41, %s3336_s3 }
 0x577   :  { %v685_v44 = vpop.permute.xlu1 %684 }
 0x578   :  { %2727 = vmatmul.mubr.msk.f32.vlgmr.msra.gmra.mrb[6].mxu0 %vm209_vm2, %v685_v44 }
 0x579   :  { %2975 = vmatpush3.bf16.msra.mxu0 %v3516_v39  ;;  %2748 = vmatprep.mubr.msk.f32.mxu0 %vm3333_vm0, %v3334_v1 }
 0x57a   :  { %2976 = vmatprep.subr.bf16.mxu0 %v3332_v0 }
 0x57d   :  { %2978 = vmatpush3.bf16.msra.mxu0 %v3523_v43 }
 0x57e   :  { %2985 = vmatprep.subr.bf16.mxu0 %v3332_v0 }
 0x5da   :  { %v610_v45 = vpop.permute.xlu0 %609 }
 0x5db   :  { %2716 = vmatmul.mubr.msk.f32.vlgmr.msra.gmra.mrb[4].mxu1 %vm209_vm2, %v610_v45 }
 0x5dc   :  { %2969 = vmatpush3.bf16.msra.mxu1 %v3480_v8  ;;  %2737 = vmatprep.mubr.msk.f32.mxu1 %vm3333_vm0, %v3334_v1 }
 0x5dd   :  { %2970 = vmatprep.subr.bf16.mxu1 %v3332_v0 }
 0x5e0   :  { %2972 = vmatpush3.bf16.msra.mxu1 %v3488_v13 }
 0x5e1   :  { %2979 = vmatprep.subr.bf16.mxu1 %v3332_v0 }
 0x5e3   :  { %2738 = vmatmul.mubr.msk.f32.vlgmr.msra.gmra.mrb[6].mxu1 %vm209_vm2, %v610_v45 }
 0x5e4   :  { %2981 = vmatpush3.bf16.msra.mxu1 %v3514_v35  ;;  %2759 = vmatprep.mubr.msk.f32.mxu1 %vm3333_vm0, %v3334_v1 }
 0x5e5   :  { %2982 = vmatprep.subr.bf16.mxu1 %v3332_v0 }
 0x5e8   :  { %2984 = vmatpush3.bf16.msra.mxu1 %v3519_v42 }
 0x5e9   :  { %2991 = vmatprep.subr.bf16.mxu1 %v3332_v0 }
 0x64b   :  { %v754_v46 = vpop.f32.mrb[6].mxu0 }
 0x64c   :  { %v765_v47 = vadd.f32 %v754_v46, %v3546_v53  ;;  %v2728_v48 = vpop.f32.mrb[7].mxu0 }
 0x64e   :  { %767 = vrot.lane.b32.xlu1 %v765_v47, %s3335_s22 }
 0x6ae   :  { %v679_v49 = vpop.f32.mrb[4].mxu1 }
 0x6af   :  { %v680_v50 = vadd.f32 %v3567_v56, %v679_v49  ;;  %v2717_v51 = vpop.f32.mrb[5].mxu1 }
 0x6b1   :  { %v758_v52 = vadd.f32 %v754_v46, %v680_v50 }
 0x6b3   :  { %v2501_v54 = vmul.f32 -1.442695, %v758_v52 }
 0x6b5   :  { %3106 = vpow2.f32 %v2501_v54 }
 0x6b6   :  { %v851_v55 = vpop.f32.mrb[6].mxu1 }
 0x6b7   :  { %v865_v57 = vadd.f32 %v851_v55, %v3505_v18  ;;  %v2739_v58 = vpop.f32.mrb[7].mxu1  ;;  %v856_v3 = vrot.slane %v851_v55, 4 }
 0x6b9   :  { %v867_v59 = vrot.slane %v865_v57, 4  ;;  %v858_v4 = vadd.f32 %v856_v3, %v3509_v22 }
 0x6bb   :  { %868 = vrot.lane.b32.xlu0 %v867_v59, %s3335_s22  ;;  %v2503_v5 = vmul.f32 -1.442695, %v858_v4 }
 0x6bf   :  { %v3107_v60 = vpop.eup %3106 }
 0x6c0   :  { %v762_v61 = vadd.f32 1.0, %v3107_v60  ;;  %v768_v63 = vpop.permute.xlu1 %767 }
 0x6c2   :  { %3108 = vrcp.f32 %v762_v61 }
 0x6c3   :  { %3110 = vpow2.f32 %v2503_v5 }
 0x6cc   :  { %v3109_v62 = vpop.eup %3108 }
 0x6cd   :  { %v770_v2 = vmul.f32 %v3109_v62, %v768_v63  ;;  %v3111_v6 = vpop.eup %3110  ;;  %v777_v21 = vsub.f32 1.0, %v3109_v62  ;;  %v783_v24 = vmul.f32 %v3109_v62, %v3578_v32 }
 0x6ce   :  { %v862_v7 = vadd.f32 1.0, %v3111_v6 }
 0x6cf   :  { %772 = vrot.lane.b32.xlu1 %v770_v2, %s3335_s22 }
 0x6d0   :  { %3112 = vrcp.f32 %v862_v7 }
 0x6da   :  { %v3113_v9 = vpop.eup %3112 }
 0x6db   :  { %v878_v28 = vsub.f32 1.0, %v3113_v9  ;;  %v886_v30 = vmul.f32 %v3113_v9, %v884_v27 }
 0x72d   :  { %v869_v10 = vpop.permute.xlu0 %868 }
 0x72e   :  { %v871_v11 = vmul.f32 %v3113_v9, %v869_v10 }
 0x730   :  { %873 = vrot.lane.b32.xlu0 %v871_v11, %s3335_s22 }
 0x741   :  { %v773_v12 = vpop.permute.xlu1 %772 }
 0x742   :  { %v775_v14 = vadd.f32 %v773_v12, %v680_v50 }
 0x744   :  { %3114 = vtanh.f32 %v775_v14 }
 0x74e   :  { %v3115_v15 = vpop.eup %3114 }
 0x74f   :  { %779 = vrot.lane.b32.xlu1 %v3115_v15, %s3336_s3 }
 0x7a2   :  { %v874_v17 = vpop.permute.xlu0 %873 }
 0x7a3   :  { %v876_v19 = vadd.f32 %v874_v17, %v3509_v22 }
 0x7a5   :  { %3116 = vtanh.f32 %v876_v19 }
 0x7af   :  { %v3117_v20 = vpop.eup %3116 }
 0x7b0   :  { %880 = vrot.lane.b32.xlu0 %v3117_v20, %s3336_s3 }
 0x7c1   :  { %v780_v23 = vpop.permute.xlu1 %779 }
 0x7c2   :  { %v782_v25 = vmul.f32 %v780_v23, %v777_v21 }
 0x7c4   :  { %v3620_v26 = vadd.f32 %v783_v24, %v782_v25 }
 0x7c6   :  { %965 = vrot.lane.b32.xlu1 %v3620_v26, %s3336_s3 }
 0x822   :  { %v881_v29 = vpop.permute.xlu0 %880 }
 0x823   :  { %v883_v31 = vmul.f32 %v881_v29, %v878_v28 }
 0x825   :  { %v3625_v33 = vadd.f32 %v886_v30, %v883_v31 }
 0x827   :  { %v889_v34 = vrot.slane %v3625_v33, 4  ;;  %v1165_v20 = vrot.slane %v3625_v33, 6 }
 0x829   :  { %890 = vrot.lane.b32.xlu0 %v889_v34, %s3336_s3 }
 0x838   :  { %v966_v36 = vpop.permute.xlu1 %965 }
 0x839   :  { %2760 = vmatmul.mubr.msk.f32.vlgmr.msra.gmra.mrb[8].mxu1 %vm209_vm2, %v966_v36 }
 0x83a   :  { %2993 = vmatpush3.bf16.msra.mxu1 %v3516_v39  ;;  %2781 = vmatprep.mubr.msk.f32.mxu1 %vm3333_vm0, %v3334_v1 }
 0x83b   :  { %2994 = vmatprep.subr.bf16.mxu1 %v3332_v0 }
 0x83e   :  { %2996 = vmatpush3.bf16.msra.mxu1 %v3523_v43 }
 0x83f   :  { %3003 = vmatprep.subr.bf16.mxu1 %v3332_v0 }
 0x89b   :  { %v891_v32 = vpop.permute.xlu0 %890 }
 0x89c   :  { %2749 = vmatmul.mubr.msk.f32.vlgmr.msra.gmra.mrb[8].mxu0 %vm209_vm2, %v891_v32 }
 0x89d   :  { %2987 = vmatpush3.bf16.msra.mxu0 %v3480_v8  ;;  %2770 = vmatprep.mubr.msk.f32.mxu0 %vm3333_vm0, %v3334_v1 }
 0x89e   :  { %2988 = vmatprep.subr.bf16.mxu0 %v3332_v0 }
 0x8a1   :  { %2990 = vmatpush3.bf16.msra.mxu0 %v3488_v13 }
 0x8a2   :  { %2997 = vmatprep.subr.bf16.mxu0 %v3332_v0 }
 0x8a4   :  { %2771 = vmatmul.mubr.msk.f32.vlgmr.msra.gmra.mrb[10].mxu0 %vm209_vm2, %v891_v32 }
 0x8a5   :  { %2999 = vmatpush3.bf16.msra.mxu0 %v3514_v35  ;;  %2792 = vmatprep.mubr.msk.f32.mxu0 %vm3333_vm0, %v3334_v1 }
 0x8a6   :  { %3000 = vmatprep.subr.bf16.mxu0 %v3332_v0 }
 0x8a9   :  { %3002 = vmatpush3.bf16.msra.mxu0 %v3519_v42 }
 0x8aa   :  { %3009 = vmatprep.subr.bf16.mxu0 %v3332_v0 }
 0x90c   :  { %v1035_v37 = vpop.f32.mrb[8].mxu1 }
 0x90d   :  { %v1046_v38 = vadd.f32 %v1035_v37, %v3546_v53  ;;  %v2761_v40 = vpop.f32.mrb[9].mxu1 }
 0x90f   :  { %1048 = vrot.lane.b32.xlu1 %v1046_v38, %s3335_s22 }
 0x96f   :  { %v960_v41 = vpop.f32.mrb[8].mxu0 }
 0x970   :  { %v961_v44 = vadd.f32 %v3567_v56, %v960_v41  ;;  %v2750_v45 = vpop.f32.mrb[9].mxu0 }
 0x972   :  { %v1039_v46 = vadd.f32 %v1035_v37, %v961_v44 }
 0x974   :  { %v2506_v47 = vmul.f32 -1.442695, %v1039_v46 }
 0x976   :  { %3118 = vpow2.f32 %v2506_v47 }
 0x977   :  { %v1132_v48 = vpop.f32.mrb[10].mxu0 }
 0x978   :  { %v1146_v49 = vadd.f32 %v1132_v48, %v3505_v18  ;;  %v2772_v50 = vpop.f32.mrb[11].mxu0  ;;  %v1137_v59 = vrot.slane %v1132_v48, 2 }
 0x97a   :  { %v1148_v51 = vrot.slane %v1146_v49, 2  ;;  %v1139_v60 = vadd.f32 %v1137_v59, %v3509_v22 }
 0x97c   :  { %1149 = vrot.lane.b32.xlu0 %v1148_v51, %s3335_s22  ;;  %v2508_v61 = vmul.f32 -1.442695, %v1139_v60 }
 0x980   :  { %v3119_v52 = vpop.eup %3118 }
 0x981   :  { %v1043_v54 = vadd.f32 1.0, %v3119_v52  ;;  %v1049_v57 = vpop.permute.xlu1 %1048 }
 0x983   :  { %3120 = vrcp.f32 %v1043_v54 }
 0x984   :  { %3122 = vpow2.f32 %v2508_v61 }
 0x98d   :  { %v3121_v55 = vpop.eup %3120 }
 0x98e   :  { %v1051_v58 = vmul.f32 %v3121_v55, %v1049_v57  ;;  %v3123_v62 = vpop.eup %3122  ;;  %v1058_v12 = vsub.f32 1.0, %v3121_v55  ;;  %v1064_v15 = vmul.f32 %v3121_v55, %v3620_v26 }
 0x98f   :  { %v1143_v63 = vadd.f32 1.0, %v3123_v62 }
 0x990   :  { %1053 = vrot.lane.b32.xlu1 %v1051_v58, %s3335_s22 }
 0x991   :  { %3124 = vrcp.f32 %v1143_v63 }
 0x99b   :  { %v3125_v2 = vpop.eup %3124 }
 0x99c   :  { %v1159_v21 = vsub.f32 1.0, %v3125_v2  ;;  %v1167_v24 = vmul.f32 %v3125_v2, %v1165_v20 }
 0x9ee   :  { %v1150_v3 = vpop.permute.xlu0 %1149 }
 0x9ef   :  { %v1152_v4 = vmul.f32 %v3125_v2, %v1150_v3 }
 0x9f1   :  { %1154 = vrot.lane.b32.xlu0 %v1152_v4, %s3335_s22 }
 0xa02   :  { %v1054_v5 = vpop.permute.xlu1 %1053 }
 0xa03   :  { %v1056_v6 = vadd.f32 %v1054_v5, %v961_v44 }
 0xa05   :  { %3126 = vtanh.f32 %v1056_v6 }
 0xa0f   :  { %v3127_v7 = vpop.eup %3126 }
 0xa10   :  { %1060 = vrot.lane.b32.xlu1 %v3127_v7, %s3336_s3 }
 0xa63   :  { %v1155_v9 = vpop.permute.xlu0 %1154 }
 0xa64   :  { %v1157_v10 = vadd.f32 %v1155_v9, %v3509_v22 }
 0xa66   :  { %3128 = vtanh.f32 %v1157_v10 }
 0xa70   :  { %v3129_v11 = vpop.eup %3128 }
 0xa71   :  { %1161 = vrot.lane.b32.xlu0 %v3129_v11, %s3336_s3 }
 0xa82   :  { %v1061_v14 = vpop.permute.xlu1 %1060 }
 0xa83   :  { %v1063_v17 = vmul.f32 %v1061_v14, %v1058_v12 }
 0xa85   :  { %v3662_v19 = vadd.f32 %v1064_v15, %v1063_v17 }
 0xa87   :  { %1246 = vrot.lane.b32.xlu1 %v3662_v19, %s3336_s3 }
 0xae3   :  { %v1162_v23 = vpop.permute.xlu0 %1161 }
 0xae4   :  { %v1164_v22 = vmul.f32 %v1162_v23, %v1159_v21 }
 0xae6   :  { %v3667_v25 = vadd.f32 %v1167_v24, %v1164_v22 }
 0xae8   :  { %v1170_v27 = vrot.slane %v3667_v25, 6 }
 0xaea   :  { %1171 = vrot.lane.b32.xlu0 %v1170_v27, %s3336_s3 }
 0xaf9   :  { %v1247_v26 = vpop.permute.xlu1 %1246 }
 0xafa   :  { %2793 = vmatmul.mubr.msk.f32.vlgmr.msra.gmra.mrb[12].mxu0 %vm209_vm2, %v1247_v26 }
 0xafb   :  { %3011 = vmatpush3.bf16.msra.mxu0 %v3516_v39  ;;  %2814 = vmatprep.mubr.msk.f32.mxu0 %vm3333_vm0, %v3334_v1 }
 0xafc   :  { %3012 = vmatprep.subr.bf16.mxu0 %v3332_v0 }
 0xaff   :  { %3014 = vmatpush3.bf16.msra.mxu0 %v3523_v43 }
 0xb00   :  { %3021 = vmatprep.subr.bf16.mxu0 %v3332_v0 }
 0xb5c   :  { %v1172_v28 = vpop.permute.xlu0 %1171 }
 0xb5d   :  { %2782 = vmatmul.mubr.msk.f32.vlgmr.msra.gmra.mrb[10].mxu1 %vm209_vm2, %v1172_v28 }
 0xb5e   :  { %3005 = vmatpush3.bf16.msra.mxu1 %v3480_v8  ;;  %2803 = vmatprep.mubr.msk.f32.mxu1 %vm3333_vm0, %v3334_v1 }
 0xb5f   :  { %3006 = vmatprep.subr.bf16.mxu1 %v3332_v0 }
 0xb62   :  { %3008 = vmatpush3.bf16.msra.mxu1 %v3488_v13 }
 0xb63   :  { %3015 = vmatprep.subr.bf16.mxu1 %v3332_v0 }
 0xb65   :  { %2804 = vmatmul.mubr.msk.f32.vlgmr.msra.gmra.mrb[12].mxu1 %vm209_vm2, %v1172_v28 }
 0xb66   :  { %3017 = vmatpush3.bf16.msra.mxu1 %v3514_v35  ;;  %2825 = vmatprep.mubr.msk.f32.mxu1 %vm3333_vm0, %v3334_v1 }
 0xb67   :  { %3018 = vmatprep.subr.bf16.mxu1 %v3332_v0 }
 0xb6a   :  { %3020 = vmatpush3.bf16.msra.mxu1 %v3519_v42 }
 0xb6b   :  { %3027 = vmatprep.subr.bf16.mxu1 %v3332_v0 }
 0xbcd   :  { %v1316_v29 = vpop.f32.mrb[12].mxu0 }
 0xbce   :  { %v1327_v30 = vadd.f32 %v1316_v29, %v3546_v53  ;;  %v2794_v31 = vpop.f32.mrb[13].mxu0 }
 0xbd0   :  { %1329 = vrot.lane.b32.xlu1 %v1327_v30, %s3335_s22 }
 0xc30   :  { %v1241_v33 = vpop.f32.mrb[10].mxu1 }
 0xc31   :  { %v1242_v34 = vadd.f32 %v3567_v56, %v1241_v33  ;;  %v2783_v36 = vpop.f32.mrb[11].mxu1 }
 0xc33   :  { %v1320_v32 = vadd.f32 %v1316_v29, %v1242_v34 }
 0xc35   :  { %v2511_v37 = vmul.f32 -1.442695, %v1320_v32 }
 0xc37   :  { %3130 = vpow2.f32 %v2511_v37 }
 0xc38   :  { %v1413_v38 = vpop.f32.mrb[12].mxu1 }
 0xc39   :  { %v1424_v40 = vadd.f32 %v1413_v38, %v3505_v18  ;;  %v2805_v41 = vpop.f32.mrb[13].mxu1  ;;  %v1417_v49 = vadd.f32 %v1413_v38, %v3503_v16 }
 0xc3b   :  { %1426 = vrot.lane.b32.xlu0 %v1424_v40, %s3335_s22  ;;  %v2513_v50 = vmul.f32 -1.442695, %v1417_v49 }
 0xc41   :  { %v3131_v44 = vpop.eup %3130 }
 0xc42   :  { %v1324_v45 = vadd.f32 1.0, %v3131_v44  ;;  %v1330_v47 = vpop.permute.xlu1 %1329 }
 0xc44   :  { %3132 = vrcp.f32 %v1324_v45 }
 0xc45   :  { %3134 = vpow2.f32 %v2513_v50 }
 0xc4e   :  { %v3133_v46 = vpop.eup %3132 }
 0xc4f   :  { %v1332_v48 = vmul.f32 %v3133_v46, %v1330_v47  ;;  %v3135_v51 = vpop.eup %3134  ;;  %v1339_v2 = vsub.f32 1.0, %v3133_v46  ;;  %v1345_v4 = vmul.f32 %v3133_v46, %v3662_v19 }
 0xc50   :  { %v1421_v52 = vadd.f32 1.0, %v3135_v51 }
 0xc51   :  { %1334 = vrot.lane.b32.xlu1 %v1332_v48, %s3335_s22 }
 0xc52   :  { %3136 = vrcp.f32 %v1421_v52 }
 0xc5c   :  { %v3137_v54 = vpop.eup %3136 }
 0xc5d   :  { %v1436_v7 = vsub.f32 1.0, %v3137_v54  ;;  %v1443_v10 = vmul.f32 %v3137_v54, %v1170_v27 }
 0xcad   :  { %v1427_v55 = vpop.permute.xlu0 %1426 }
 0xcae   :  { %v1429_v57 = vmul.f32 %v3137_v54, %v1427_v55 }
 0xcb0   :  { %1431 = vrot.lane.b32.xlu0 %v1429_v57, %s3335_s22 }
 0xcc3   :  { %v1335_v58 = vpop.permute.xlu1 %1334 }
 0xcc4   :  { %v1337_v59 = vadd.f32 %v1335_v58, %v1242_v34 }
 0xcc6   :  { %3138 = vtanh.f32 %v1337_v59 }
 0xcd0   :  { %v3139_v60 = vpop.eup %3138 }
 0xcd1   :  { %1341 = vrot.lane.b32.xlu1 %v3139_v60, %s3336_s3 }
 0xd22   :  { %v1432_v61 = vpop.permute.xlu0 %1431 }
 0xd23   :  { %v1434_v62 = vadd.f32 %v1432_v61, %v3503_v16 }
 0xd25   :  { %3140 = vtanh.f32 %v1434_v62 }
 0xd2f   :  { %v3141_v63 = vpop.eup %3140 }
 0xd30   :  { %1438 = vrot.lane.b32.xlu0 %v3141_v63, %s3336_s3 }
 0xd43   :  { %v1342_v3 = vpop.permute.xlu1 %1341 }
 0xd44   :  { %v1344_v5 = vmul.f32 %v1342_v3, %v1339_v2 }
 0xd46   :  { %v3706_v6 = vadd.f32 %v1345_v4, %v1344_v5 }
 0xd48   :  { %1521 = vrot.lane.b32.xlu1 %v3706_v6, %s3336_s3 }
 0xda2   :  { %v1439_v9 = vpop.permute.xlu0 %1438 }
 0xda3   :  { %v1441_v11 = vmul.f32 %v1439_v9, %v1436_v7 }
 0xda5   :  { %v3712_v12 = vadd.f32 %v1443_v10, %v1441_v11 }
 0xda7   :  { %1446 = vrot.lane.b32.xlu0 %v3712_v12, %s3336_s3  ;;  %v1721_v60 = vrot.slane %v3712_v12, 6 }
 0xdba   :  { %v1522_v14 = vpop.permute.xlu1 %1521 }
 0xdbb   :  { %2826 = vmatmul.mubr.msk.f32.vlgmr.msra.gmra.mrb[14].mxu1 %vm209_vm2, %v1522_v14 }
 0xdbc   :  { %3029 = vmatpush3.bf16.msra.mxu1 %v3516_v39  ;;  %2847 = vmatprep.mubr.msk.f32.mxu1 %vm3333_vm0, %v3334_v1 }
 0xdbd   :  { %3030 = vmatprep.subr.bf16.mxu1 %v3332_v0 }
 0xdc0   :  { %3032 = vmatpush3.bf16.msra.mxu1 %v3523_v43 }
 0xdc1   :  { %3039 = vmatprep.subr.bf16.mxu1 %v3332_v0 }
 0xe19   :  { %v1447_v15 = vpop.permute.xlu0 %1446 }
 0xe1a   :  { %2815 = vmatmul.mubr.msk.f32.vlgmr.msra.gmra.mrb[14].mxu0 %vm209_vm2, %v1447_v15 }
 0xe1b   :  { %3023 = vmatpush3.bf16.msra.mxu0 %v3480_v8  ;;  %2836 = vmatprep.mubr.msk.f32.mxu0 %vm3333_vm0, %v3334_v1 }
 0xe1c   :  { %3024 = vmatprep.subr.bf16.mxu0 %v3332_v0 }
 0xe1f   :  { %3026 = vmatpush3.bf16.msra.mxu0 %v3488_v13 }
 0xe20   :  { %3033 = vmatprep.subr.bf16.mxu0 %v3332_v0 }
 0xe22   :  { %2837 = vmatmul.mubr.msk.f32.vlgmr.msra.gmra.mrb[16].mxu0 %vm209_vm2, %v1447_v15 }
 0xe23   :  { %3035 = vmatpush3.bf16.msra.mxu0 %v3514_v35  ;;  %2858 = vmatprep.mubr.msk.f32.mxu0 %vm3333_vm0, %v3334_v1 }
 0xe24   :  { %3036 = vmatprep.subr.bf16.mxu0 %v3332_v0 }
 0xe27   :  { %3038 = vmatpush3.bf16.msra.mxu0 %v3519_v42 }
 0xe28   :  { %3045 = vmatprep.subr.bf16.mxu0 %v3332_v0 }
 0xe8e   :  { %v1591_v17 = vpop.f32.mrb[14].mxu1 }
 0xe8f   :  { %v1602_v19 = vadd.f32 %v1591_v17, %v3546_v53  ;;  %v2827_v20 = vpop.f32.mrb[15].mxu1 }
 0xe91   :  { %1604 = vrot.lane.b32.xlu0 %v1602_v19, %s3335_s22 }
 0xeed   :  { %v1516_v21 = vpop.f32.mrb[14].mxu0 }
 0xeee   :  { %v1517_v23 = vadd.f32 %v3567_v56, %v1516_v21  ;;  %v2816_v24 = vpop.f32.mrb[15].mxu0 }
 0xef0   :  { %v1595_v22 = vadd.f32 %v1591_v17, %v1517_v23 }
 0xef2   :  { %v2516_v25 = vmul.f32 -1.442695, %v1595_v22 }
 0xef4   :  { %3142 = vpow2.f32 %v2516_v25 }
 0xef5   :  { %v1688_v27 = vpop.f32.mrb[16].mxu0 }
 0xef6   :  { %v1702_v26 = vadd.f32 %v1688_v27, %v3505_v18  ;;  %v2838_v28 = vpop.f32.mrb[17].mxu0  ;;  %v1693_v32 = vrot.slane %v1688_v27, 6 }
 0xef8   :  { %v1704_v29 = vrot.slane %v1702_v26, 6  ;;  %v1695_v37 = vadd.f32 %v1693_v32, %v3503_v16 }
 0xefa   :  { %1705 = vrot.lane.b32.xlu1 %v1704_v29, %s3335_s22  ;;  %v2518_v38 = vmul.f32 -1.442695, %v1695_v37 }
 0xefe   :  { %v3143_v30 = vpop.eup %3142 }
 0xeff   :  { %v1599_v31 = vadd.f32 1.0, %v3143_v30 }
 0xf01   :  { %3144 = vrcp.f32 %v1599_v31 }
 0xf02   :  { %3146 = vpow2.f32 %v2518_v38 }
 0xf03   :  { %v1605_v34 = vpop.permute.xlu0 %1604 }
 0xf0b   :  { %v3145_v33 = vpop.eup %3144 }
 0xf0c   :  { %v1607_v36 = vmul.f32 %v3145_v33, %v1605_v34  ;;  %v3147_v40 = vpop.eup %3146  ;;  %v1614_v54 = vsub.f32 1.0, %v3145_v33  ;;  %v1620_v57 = vmul.f32 %v3145_v33, %v3706_v6 }
 0xf0d   :  { %v1699_v41 = vadd.f32 1.0, %v3147_v40 }
 0xf0e   :  { %1609 = vrot.lane.b32.xlu0 %v1607_v36, %s3335_s22 }
 0xf0f   :  { %3148 = vrcp.f32 %v1699_v41 }
 0xf19   :  { %v3149_v44 = vpop.eup %3148 }
 0xf1a   :  { %v1715_v61 = vsub.f32 1.0, %v3149_v44  ;;  %v1723_v63 = vmul.f32 %v3149_v44, %v1721_v60 }
 0xf6c   :  { %v1706_v45 = vpop.permute.xlu1 %1705 }
 0xf6d   :  { %v1708_v46 = vmul.f32 %v3149_v44, %v1706_v45 }
 0xf6f   :  { %1710 = vrot.lane.b32.xlu1 %v1708_v46, %s3335_s22 }
 0xf80   :  { %v1610_v47 = vpop.permute.xlu0 %1609 }
 0xf81   :  { %v1612_v48 = vadd.f32 %v1610_v47, %v1517_v23 }
 0xf83   :  { %3150 = vtanh.f32 %v1612_v48 }
 0xf8d   :  { %v3151_v49 = vpop.eup %3150 }
 0xf8e   :  { %1616 = vrot.lane.b32.xlu0 %v3151_v49, %s3336_s3 }
 0xfe1   :  { %v1711_v50 = vpop.permute.xlu1 %1710 }
 0xfe2   :  { %v1713_v51 = vadd.f32 %v1711_v50, %v3503_v16 }
 0xfe4   :  { %3152 = vtanh.f32 %v1713_v51 }
 0xfee   :  { %v3153_v52 = vpop.eup %3152 }
 0xfef   :  { %1717 = vrot.lane.b32.xlu1 %v3153_v52, %s3336_s3 }
0x1000   :  { %v1617_v55 = vpop.permute.xlu0 %1616 }
0x1001   :  { %v1619_v58 = vmul.f32 %v1617_v55, %v1614_v54 }
0x1003   :  { %v3749_v59 = vadd.f32 %v1620_v57, %v1619_v58 }
0x1005   :  { %1802 = vrot.lane.b32.xlu0 %v3749_v59, %s3336_s3 }
0x1061   :  { %v1718_v62 = vpop.permute.xlu1 %1717 }
0x1062   :  { %v1720_v2 = vmul.f32 %v1718_v62, %v1715_v61 }
0x1064   :  { %v3754_v3 = vadd.f32 %v1723_v63, %v1720_v2 }
0x1066   :  { %v1726_v4 = vrot.slane %v3754_v3, 2  ;;  %v2002_v51 = vrot.slane %v3754_v3, 6 }
0x1068   :  { %1727 = vrot.lane.b32.xlu1 %v1726_v4, %s3336_s3 }
0x1077   :  { %v1803_v5 = vpop.permute.xlu0 %1802 }
0x1078   :  { %2859 = vmatmul.mubr.msk.f32.vlgmr.msra.gmra.mrb[18].mxu0 %vm209_vm2, %v1803_v5 }
0x1079   :  { %3047 = vmatpush3.bf16.msra.mxu0 %v3516_v39  ;;  %2880 = vmatprep.mubr.msk.f32.mxu0 %vm3333_vm0, %v3334_v1 }
0x107a   :  { %3048 = vmatprep.subr.bf16.mxu0 %v3332_v0 }
0x107d   :  { %3050 = vmatpush3.bf16.msra.mxu0 %v3523_v43 }
0x107e   :  { %3057 = vmatprep.subr.bf16.mxu0 %v3332_v0 }
0x10da   :  { %v1728_v6 = vpop.permute.xlu1 %1727 }
0x10db   :  { %2848 = vmatmul.mubr.msk.f32.vlgmr.msra.gmra.mrb[16].mxu1 %vm209_vm2, %v1728_v6 }
0x10dc   :  { %3041 = vmatpush3.bf16.msra.mxu1 %v3480_v8  ;;  %2869 = vmatprep.mubr.msk.f32.mxu1 %vm3333_vm0, %v3334_v1 }
0x10dd   :  { %3042 = vmatprep.subr.bf16.mxu1 %v3332_v0 }
0x10e0   :  { %3044 = vmatpush3.bf16.msra.mxu1 %v3488_v13 }
0x10e1   :  { %3051 = vmatprep.subr.bf16.mxu1 %v3332_v0 }
0x10e3   :  { %2870 = vmatmul.mubr.msk.f32.vlgmr.msra.gmra.mrb[18].mxu1 %vm209_vm2, %v1728_v6 }
0x10e4   :  { %3053 = vmatpush3.bf16.msra.mxu1 %v3514_v35  ;;  %2891 = vmatprep.mubr.msk.f32.mxu1 %vm3333_vm0, %v3334_v1 }
0x10e5   :  { %3054 = vmatprep.subr.bf16.mxu1 %v3332_v0 }
0x10e8   :  { %3056 = vmatpush3.bf16.msra.mxu1 %v3519_v42 }
0x10e9   :  { %3063 = vmatprep.subr.bf16.mxu1 %v3332_v0 }
0x114b   :  { %v1872_v7 = vpop.f32.mrb[18].mxu0 }
0x114c   :  { %v1883_v9 = vadd.f32 %v1872_v7, %v3546_v53  ;;  %v2860_v10 = vpop.f32.mrb[19].mxu0 }
0x114e   :  { %1885 = vrot.lane.b32.xlu0 %v1883_v9, %s3335_s22 }
0x11ae   :  { %v1797_v11 = vpop.f32.mrb[16].mxu1 }
0x11af   :  { %v1798_v12 = vadd.f32 %v3567_v56, %v1797_v11  ;;  %v2849_v14 = vpop.f32.mrb[17].mxu1 }
0x11b1   :  { %v1876_v15 = vadd.f32 %v1872_v7, %v1798_v12 }
0x11b3   :  { %v2521_v17 = vmul.f32 -1.442695, %v1876_v15 }
0x11b5   :  { %3154 = vpow2.f32 %v2521_v17 }
0x11b6   :  { %v1969_v19 = vpop.f32.mrb[18].mxu1 }
0x11b7   :  { %v1983_v20 = vadd.f32 %v1969_v19, %v3505_v18  ;;  %v2871_v21 = vpop.f32.mrb[19].mxu1  ;;  %v1974_v28 = vrot.slane %v1969_v19, 4 }
0x11b9   :  { %v1985_v23 = vrot.slane %v1983_v20, 4  ;;  %v1976_v29 = vadd.f32 %v1974_v28, %v3503_v16 }
0x11bb   :  { %1986 = vrot.lane.b32.xlu1 %v1985_v23, %s3335_s22  ;;  %v2523_v30 = vmul.f32 -1.442695, %v1976_v29 }
0x11bf   :  { %v3155_v24 = vpop.eup %3154 }
0x11c0   :  { %v1880_v22 = vadd.f32 1.0, %v3155_v24  ;;  %v1886_v27 = vpop.permute.xlu0 %1885 }
0x11c2   :  { %3156 = vrcp.f32 %v1880_v22 }
0x11c3   :  { %3158 = vpow2.f32 %v2523_v30 }
0x11cc   :  { %v3157_v25 = vpop.eup %3156 }
0x11cd   :  { %v1888_v26 = vmul.f32 %v3157_v25, %v1886_v27  ;;  %v3159_v31 = vpop.eup %3158  ;;  %v1895_v46 = vsub.f32 1.0, %v3157_v25  ;;  %v1901_v48 = vmul.f32 %v3157_v25, %v3749_v59 }
0x11ce   :  { %v1980_v33 = vadd.f32 1.0, %v3159_v31 }
0x11cf   :  { %1890 = vrot.lane.b32.xlu0 %v1888_v26, %s3335_s22 }
0x11d0   :  { %3160 = vrcp.f32 %v1980_v33 }
0x11da   :  { %v3161_v34 = vpop.eup %3160 }
0x11db   :  { %v1996_v52 = vsub.f32 1.0, %v3161_v34  ;;  %v2004_v55 = vmul.f32 %v3161_v34, %v2002_v51 }
0x122d   :  { %v1987_v36 = vpop.permute.xlu1 %1986 }
0x122e   :  { %v1989_v32 = vmul.f32 %v3161_v34, %v1987_v36 }
0x1230   :  { %1991 = vrot.lane.b32.xlu1 %v1989_v32, %s3335_s22 }
0x1241   :  { %v1891_v37 = vpop.permute.xlu0 %1890 }
0x1242   :  { %v1893_v38 = vadd.f32 %v1891_v37, %v1798_v12 }
0x1244   :  { %3162 = vtanh.f32 %v1893_v38 }
0x124e   :  { %v3163_v40 = vpop.eup %3162 }
0x124f   :  { %1897 = vrot.lane.b32.xlu0 %v3163_v40, %s3336_s3 }
0x12a2   :  { %v1992_v41 = vpop.permute.xlu1 %1991 }
0x12a3   :  { %v1994_v44 = vadd.f32 %v1992_v41, %v3503_v16 }
0x12a5   :  { %3164 = vtanh.f32 %v1994_v44 }
0x12af   :  { %v3165_v45 = vpop.eup %3164 }
0x12b0   :  { %1998 = vrot.lane.b32.xlu1 %v3165_v45, %s3336_s3 }
0x12c1   :  { %v1898_v47 = vpop.permute.xlu0 %1897 }
0x12c2   :  { %v1900_v49 = vmul.f32 %v1898_v47, %v1895_v46  ;;  %v3184_v46 = vld [vmem:[%s3863_s7] ss:$0 sm:$0xff]  ;;  %s3337_s7 = smov [#allocation11]  }
0x12c3   :  { %s2477_s1 = sshll.u32 %s3337_s7, 4  ;;  %s2478_s1 = int_to_ptr.vmem [resolvable:$true] %s2477_s1 }
0x12c4   :  { %v3791_v50 = vadd.f32 %v1901_v48, %v1900_v49  ;;  %s3295_s10 = scalar_lea.vmem %s2478_s1, 32  ;;  %p3300_p13 = scmp.lt.s32.totalorder %s2478_s1, %s2478_s1 }
0x12c5   :  { %p3296_p12 = scmp.ne.s32.totalorder %s2478_s1, %s3295_s10  ;;  %p3301_p0 = scmp.lt.s32.totalorder %s3295_s10, %s3295_s10 }
0x12c6   :  { %2083 = vrot.lane.b32.xlu0 %v3791_v50, %s3336_s3 }
0x12c7   :  { %p3302_p1 = por %p3301_p0, %p3300_p13 }
0x12c9   :  { %p3303_p2 = pnand %p3302_p1, %p3296_p12 }
0x1322   :  { %v1999_v54 = vpop.permute.xlu1 %1998 }
0x1323   :  { %v2001_v57 = vmul.f32 %v1999_v54, %v1996_v52 }
0x1325   :  { %v3796_v58 = vadd.f32 %v2004_v55, %v2001_v57 }
0x1327   :  { %v2007_v60 = vrot.slane %v3796_v58, 4  ;;  %v2283_v30 = vrot.slane %v3796_v58, 6 }
0x1329   :  { %2008 = vrot.lane.b32.xlu1 %v2007_v60, %s3336_s3 }
0x1338   :  { %v2084_v61 = vpop.permute.xlu0 %2083 }
0x1339   :  { %2892 = vmatmul.mubr.msk.f32.vlgmr.msra.gmra.mrb[20].mxu1 %vm209_vm2, %v2084_v61 }
0x133a   :  { %3065 = vmatpush3.bf16.msra.mxu1 %v3516_v39  ;;  %2913 = vmatprep.mubr.msk.f32.mxu1 %vm3333_vm0, %v3334_v1 }
0x133b   :  { %3066 = vmatprep.subr.bf16.mxu1 %v3332_v0 }
0x133e   :  { %3068 = vmatpush3.bf16.msra.mxu1 %v3523_v43 }
0x139b   :  { %v2009_v59 = vpop.permute.xlu1 %2008 }
0x139c   :  { %2881 = vmatmul.mubr.msk.f32.vlgmr.msra.gmra.mrb[20].mxu0 %vm209_vm2, %v2009_v59 }
0x139d   :  { %3059 = vmatpush3.bf16.msra.mxu0 %v3480_v8  ;;  %2902 = vmatprep.mubr.msk.f32.mxu0 %vm3333_vm0, %v3334_v1 }
0x139e   :  { %3060 = vmatprep.subr.bf16.mxu0 %v3332_v0 }
0x13a1   :  { %3062 = vmatpush3.bf16.msra.mxu0 %v3488_v13 }
0x13a2   :  { %3069 = vmatprep.subr.bf16.mxu0 %v3332_v0 }
0x13a4   :  { %2903 = vmatmul.mubr.msk.f32.vlgmr.msra.gmra.mrb[22].mxu0 %vm209_vm2, %v2009_v59 }
0x13a5   :  { %3071 = vmatpush3.bf16.msra.mxu0 %v3514_v35  ;;  %2924 = vmatprep.mubr.msk.f32.mxu0 %vm3333_vm0, %v3334_v1 }
0x13a6   :  { %3072 = vmatprep.subr.bf16.mxu0 %v3332_v0 }
0x13a9   :  { %3074 = vmatpush3.bf16.msra.mxu0 %v3519_v42 }
0x140c   :  { %v2153_v8 = vpop.f32.mrb[20].mxu1 }
0x140d   :  { %v2164_v39 = vadd.f32 %v2153_v8, %v3546_v53  ;;  %v2893_v43 = vpop.f32.mrb[21].mxu1 }
0x140f   :  { %2166 = vrot.lane.b32.xlu0 %v2164_v39, %s3335_s22 }
0x146f   :  { %v2078_v13 = vpop.f32.mrb[20].mxu0 }
0x1470   :  { %v2079_v62 = vadd.f32 %v3567_v56, %v2078_v13  ;;  %v2882_v63 = vpop.f32.mrb[21].mxu0 }
0x1472   :  { %v2157_v2 = vadd.f32 %v2153_v8, %v2079_v62 }
0x1474   :  { %v2526_v3 = vmul.f32 -1.442695, %v2157_v2 }
0x1476   :  { %3166 = vpow2.f32 %v2526_v3 }
0x1477   :  { %v2250_v35 = vpop.f32.mrb[22].mxu0 }
0x1478   :  { %v2264_v1 = vadd.f32 %v2250_v35, %v3505_v18  ;;  %v2904_v4 = vpop.f32.mrb[23].mxu0  ;;  %v2255_v56 = vrot.slane %v2250_v35, 2 }
0x147a   :  { %v2266_v0 = vrot.slane %v2264_v1, 2  ;;  %v2257_v10 = vadd.f32 %v2255_v56, %v3503_v16 }
0x147c   :  { %2267 = vrot.lane.b32.xlu1 %v2266_v0, %s3335_s22  ;;  %v2528_v11 = vmul.f32 -1.442695, %v2257_v10 }
0x1480   :  { %v3167_v42 = vpop.eup %3166 }
0x1481   :  { %v2161_v5 = vadd.f32 1.0, %v3167_v42  ;;  %v2167_v7 = vpop.permute.xlu0 %2166 }
0x1483   :  { %3168 = vrcp.f32 %v2161_v5 }
0x1484   :  { %3170 = vpow2.f32 %v2528_v11 }
0x148d   :  { %v3169_v6 = vpop.eup %3168 }
0x148e   :  { %v2169_v9 = vmul.f32 %v3169_v6, %v2167_v7  ;;  %v3171_v12 = vpop.eup %3170  ;;  %v2176_v25 = vsub.f32 1.0, %v3169_v6  ;;  %v2182_v26 = vmul.f32 %v3169_v6, %v3791_v50 }
0x148f   :  { %v2261_v14 = vadd.f32 1.0, %v3171_v12 }
0x1490   :  { %2171 = vrot.lane.b32.xlu0 %v2169_v9, %s3335_s22 }
0x1491   :  { %3172 = vrcp.f32 %v2261_v14 }
0x149b   :  { %v3173_v18 = vpop.eup %3172 }
0x149c   :  { %v2277_v31 = vsub.f32 1.0, %v3173_v18  ;;  %v2285_v34 = vmul.f32 %v3173_v18, %v2283_v30 }
0x14ee   :  { %v2268_v15 = vpop.permute.xlu1 %2267 }
0x14ef   :  { %v2270_v17 = vmul.f32 %v3173_v18, %v2268_v15 }
0x14f1   :  { %2272 = vrot.lane.b32.xlu1 %v2270_v17, %s3335_s22 }
0x1502   :  { %v2172_v19 = vpop.permute.xlu0 %2171 }
0x1503   :  { %v2174_v20 = vadd.f32 %v2172_v19, %v2079_v62 }
0x1505   :  { %3174 = vtanh.f32 %v2174_v20 }
0x150f   :  { %v3175_v21 = vpop.eup %3174 }
0x1510   :  { %2178 = vrot.lane.b32.xlu0 %v3175_v21, %s3336_s3 }
0x1563   :  { %v2273_v23 = vpop.permute.xlu1 %2272 }
0x1564   :  { %v2275_v24 = vadd.f32 %v2273_v23, %v3503_v16 }
0x1566   :  { %3176 = vtanh.f32 %v2275_v24 }
0x1570   :  { %v3177_v22 = vpop.eup %3176 }
0x1571   :  { %2279 = vrot.lane.b32.xlu1 %v3177_v22, %s3336_s3 }
0x1582   :  { %v2179_v27 = vpop.permute.xlu0 %2178 }
0x1583   :  { %v2181_v28 = vmul.f32 %v2179_v27, %v2176_v25 }
0x1585   :  { %v2183_v29 = vadd.f32 %v2182_v26, %v2181_v28 }
0x1587   :  { %2364 = vrot.lane.b32.xlu0 %v2183_v29, %s3336_s3 }
0x15e3   :  { %v2280_v33 = vpop.permute.xlu1 %2279 }
0x15e4   :  { %v2282_v36 = vmul.f32 %v2280_v33, %v2277_v31 }
0x15e6   :  { %v2286_v32 = vadd.f32 %v2285_v34, %v2282_v36 }
0x15e8   :  { %v2288_v16 = vrot.slane %v2286_v32, 6 }
0x15ea   :  { %2289 = vrot.lane.b32.xlu1 %v2288_v16, %s3336_s3 }
0x15f9   :  { %v2365_v37 = vpop.permute.xlu0 %2364 }
0x15fa   :  { %2925 = vmatmul.mubr.msk.f32.vlgmr.msra.gmra.mrb[24].mxu0 %vm209_vm2, %v2365_v37 }
0x165c   :  { %v2290_v38 = vpop.permute.xlu1 %2289 }
0x165d   :  { %2914 = vmatmul.mubr.msk.f32.vlgmr.msra.gmra.mrb[22].mxu1 %vm209_vm2, %v2290_v38 }
0x16cd   :  { %v2434_v40 = vpop.f32.mrb[24].mxu0 }
0x16ce   :  { %v2445_v41 = vadd.f32 %v2434_v40, %v3546_v53  ;;  %v2926_v44 = vpop.f32.mrb[25].mxu0 }
0x16d0   :  { %2447 = vrot.lane.b32.xlu0 %v2445_v41, %s3335_s22 }
0x1730   :  { %v2359_v45 = vpop.f32.mrb[22].mxu1 }
0x1731   :  { %v2360_v47 = vadd.f32 %v3184_v46, %v2359_v45  ;;  %v2915_v48 = vpop.f32.mrb[23].mxu1 }
0x1733   :  { %v2438_v49 = vadd.f32 %v2434_v40, %v2360_v47 }
0x1735   :  { %v2531_v50 = vmul.f32 -1.442695, %v2438_v49 }
0x1737   :  { %3178 = vpow2.f32 %v2531_v50 }
0x1741   :  { %v3179_v51 = vpop.eup %3178 }
0x1742   :  { %v2442_v52 = vadd.f32 1.0, %v3179_v51  ;;  %v2448_v55 = vpop.permute.xlu0 %2447 }
0x1744   :  { %3180 = vrcp.f32 %v2442_v52 }
0x174e   :  { %v3181_v54 = vpop.eup %3180 }
0x174f   :  { %v2450_v57 = vmul.f32 %v3181_v54, %v2448_v55  ;;  %v2457_v61 = vsub.f32 1.0, %v3181_v54  ;;  %v2463_v8 = vmul.f32 %v3181_v54, %v2183_v29 }
0x1751   :  { %2452 = vrot.lane.b32.xlu1 %v2450_v57, %s3335_s22 }
0x17c3   :  { %v2453_v53 = vpop.permute.xlu1 %2452 }
0x17c4   :  { %v2455_v58 = vadd.f32 %v2453_v53, %v2360_v47 }
0x17c6   :  { %3182 = vtanh.f32 %v2455_v58 }
0x17d0   :  { %v3183_v60 = vpop.eup %3182 }
0x17d1   :  { %2459 = vrot.lane.b32.xlu0 %v3183_v60, %s3336_s3 }
0x1843   :  { %v2460_v59 = vpop.permute.xlu0 %2459 }
0x1844   :  { %v2462_v39 = vmul.f32 %v2460_v59, %v2457_v61 }
0x1846   :  { %v2464_v43 = vadd.f32 %v2463_v8, %v2462_v39 }
0x1848   :  { %2466 = vrot.lane.b32.xlu1 %v2464_v43, %s3336_s3 }
0x18ba   :  { %v2467_v13 = vpop.permute.xlu1 %2466 }
0x18bb   :  { %2470 = vst.msk [vmem:[#allocation11] sm:$0x3] %vm2469_vm3, %v2467_v13 }
0x18bc   :  { %3306 = shalt.err (!%p3303_p2)
}
0x18bd   :  { %s3307_s15 = scalar_lea.hbm %s3865_s9, 32 }
0x18be   :  { %p3308_p3 = scmp.ne.s32.totalorder %s3865_s9, %s3307_s15  ;;  %p3311_p4 = scmp.lt.u32.totalorder %s3307_s15, %s3865_s9 }
0x18c0   :  { %p3313_p5 = pnand %p3311_p4, %p3308_p3 }
0x18c2   :  { %3316 = shalt.err (!%p3313_p5)
}
0x18c3   :  { %2480 = dma.vmem_to_hbm [thread:$0]  %s2478_s1, 32, %s3865_s9, [#allocation4]  }
0x18c4   :  { %3323 = dma.done.wait [#allocation4], 32  }
0x18c5   :  { %3324 = vsyncadd [#allocation4], 4294967264 }
0x18c6   :  { %2484 = vsyncpa [#allocation3], 1 }
0x18c7   :  { %2485 = vsyncpa [#allocation6], 1 }
0x18c8   :  { %2486 = vsyncpa [#allocation9], 1 }
0x18c9   :  { %2487 = vsyncpa [#allocation4], 1 }

</bundles_post_ra>
